<compile_context>
chip_gen: v7x
topology: tpu7x:2x2x1
jax: 0.10.0
libtpu: 0.0.40
codegen_flags: <defaults>
</compile_context>

<pallas_src>
import jax
import jax.numpy as jnp
from jax.experimental import pallas as pl
from jax.experimental.pallas import tpu as pltpu

LEAKY_SLOPE = 0.01   # torch.nn.LeakyReLU default
LN_EPS = 1e-5        # torch.nn.LayerNorm default

# Head order matches MagnitudeModel.forward's return tuple.
HEAD_ORDER = ("C_CC_head", "C_CC_body", "C_CO_head", "C_CO_body",
              "G_CO_head", "G_CO_body")


# ----------------------------- Pallas kernel ------------------------------ #
def _magnitude_kernel(x_ref,
                      w_emb_ref, b_emb_ref, g0_ref, be0_ref,
                      w_skip_ref, b_skip_ref, g_skip_ref, be_skip_ref,
                      w_reg_ref, b_reg_ref,
                      w_out_ref, b_out_ref,
                      o_ref):
    """All six DeepLearningBaseline heads, batched over the leading head axis."""

    def leaky(v):
        # max(v, 0.01*v) == LeakyReLU(v); mul+max instead of cmp+select.
        return jnp.maximum(v, LEAKY_SLOPE * v)

    def layernorm(v, gamma, beta):
        mu = jnp.mean(v, axis=-1, keepdims=True)
        var = jnp.mean((v - mu) * (v - mu), axis=-1, keepdims=True)
        return (v - mu) * jax.lax.rsqrt(var + LN_EPS) * gamma + beta

    x = x_ref[...]              # (H, B, d_pad) f32, feature axis zero-padded
    w_skip = w_skip_ref[...]    # (H, L, Dh, Dh)
    b_skip = b_skip_ref[...]    # (H, L, 1, Dh)
    g_skip = g_skip_ref[...]    # (H, L, 1, Dh)
    be_skip = be_skip_ref[...]  # (H, L, 1, Dh)

    # initial embedding: LayerNorm(LeakyReLU(x @ W_emb + b_emb))  -- MXU batched
    h = jnp.einsum("hbd,hde->hbe", x, w_emb_ref[...],
                   preferred_element_type=jnp.float32) + b_emb_ref[...]
    h = layernorm(leaky(h), g0_ref[...], be0_ref[...])

    # SkipConnection stack: LayerNorm(x + LeakyReLU(Linear(x)))
    # (Dropout is identity at inference.)
    num_layers = w_skip.shape[1]        # static -> unrolled
    for l in range(num_layers):
        lin = jnp.einsum("hbd,hde->hbe", h, w_skip[:, l],
                         preferred_element_type=jnp.float32) + b_skip[:, l]
        h = layernorm(h + leaky(lin), g_skip[:, l], be_skip[:, l])

    # regression head: LeakyReLU(Linear(feature))
    r = leaky(jnp.einsum("hbd,hde->hbe", h, w_reg_ref[...],
                         preferred_element_type=jnp.float32) + b_reg_ref[...])

    # N=1 output matvec on the VPU/XLU (mul + lane reduce), not the MXU.
    out = jnp.sum(r * w_out_ref[...], axis=-1) + b_out_ref[...]   # (H, B)
    o_ref[...] = jax.nn.sigmoid(out)


def fused_magnitude_forward(x_stack, sp):
    """All heads in one single-invocation pallas_call (no grid).

    x_stack: (n_heads, B, d_pad) f32, feature axis zero-padded per head.
    sp:      dict of stacked params, each with leading head axis n_heads.
    Returns: (n_heads, B) f32 of sigmoid outputs.
    """
    n_heads, batch, _ = x_stack.shape

    args = (x_stack,
            sp["w_emb"], sp["b_emb"], sp["g0"], sp["be0"],
            sp["w_skip"], sp["b_skip"], sp["g_skip"], sp["be_skip"],
            sp["w_reg"], sp["b_reg"], sp["w_out"], sp["b_out"])

    vmem = lambda: pl.BlockSpec(memory_space=pltpu.MemorySpace.VMEM)

    return pl.pallas_call(
        _magnitude_kernel,
        out_shape=jax.ShapeDtypeStruct((n_heads, batch), jnp.float32),
        in_specs=[vmem() for _ in args],
        out_specs=vmem(),
    )(*args)


# -------------------------- parameter construction ------------------------ #
def init_dlb_params(key, dim_in, dim_hidden, layer_num, dim_reg):
    ks = jax.random.split(key, 8)
    scale = 0.2
    return {
        # weights stored (in, out) == PyTorch weight.T
        "w_emb": scale * jax.random.normal(ks[0], (dim_in, dim_hidden), jnp.float32),
        "b_emb": scale * jax.random.normal(ks[1], (1, dim_hidden), jnp.float32),
        "g0": jnp.ones((1, dim_hidden), jnp.float32),
        "be0": jnp.zeros((1, dim_hidden), jnp.float32),
        "w_skip": scale * jax.random.normal(ks[2], (layer_num, dim_hidden, dim_hidden), jnp.float32),
        "b_skip": scale * jax.random.normal(ks[3], (layer_num, 1, dim_hidden), jnp.float32),
        "g_skip": jnp.ones((layer_num, 1, dim_hidden), jnp.float32),
        "be_skip": jnp.zeros((layer_num, 1, dim_hidden), jnp.float32),
        "w_reg": scale * jax.random.normal(ks[4], (dim_hidden, dim_reg), jnp.float32),
        "b_reg": scale * jax.random.normal(ks[5], (1, dim_reg), jnp.float32),
        "w_out": scale * jax.random.normal(ks[6], (dim_reg, 1), jnp.float32),
        "b_out": scale * jax.random.normal(ks[7], (1, 1), jnp.float32),
    }


def stack_magnitude_params(per_head):
    """Stack the 6 heads' params along a leading head axis (pad w_emb rows)."""
    d_pad = max(per_head[n]["w_emb"].shape[0] for n in HEAD_ORDER)

    def pad_emb(w):
        return jnp.pad(w, ((0, d_pad - w.shape[0]), (0, 0)))

    return {
        "w_emb":  jnp.stack([pad_emb(per_head[n]["w_emb"]) for n in HEAD_ORDER]),
        "b_emb":  jnp.stack([per_head[n]["b_emb"] for n in HEAD_ORDER]),
        "g0":     jnp.stack([per_head[n]["g0"] for n in HEAD_ORDER]),
        "be0":    jnp.stack([per_head[n]["be0"] for n in HEAD_ORDER]),
        "w_skip": jnp.stack([per_head[n]["w_skip"] for n in HEAD_ORDER]),
        "b_skip": jnp.stack([per_head[n]["b_skip"] for n in HEAD_ORDER]),
        "g_skip": jnp.stack([per_head[n]["g_skip"] for n in HEAD_ORDER]),
        "be_skip": jnp.stack([per_head[n]["be_skip"] for n in HEAD_ORDER]),
        "w_reg":  jnp.stack([per_head[n]["w_reg"] for n in HEAD_ORDER]),
        "b_reg":  jnp.stack([per_head[n]["b_reg"] for n in HEAD_ORDER]),
        "w_out":  jnp.stack([per_head[n]["w_out"].T for n in HEAD_ORDER]),          # (6,1,R)
        "b_out":  jnp.stack([per_head[n]["b_out"].reshape(1) for n in HEAD_ORDER]),  # (6,1)
    }


# ------------------------------ JAX reference ------------------------------ #
def dlb_reference(x, p):
    def leaky(v):
        return jnp.where(v >= 0, v, LEAKY_SLOPE * v)

    def layernorm(v, g, b):
        mu = jnp.mean(v, axis=-1, keepdims=True)
        var = jnp.mean((v - mu) ** 2, axis=-1, keepdims=True)
        return (v - mu) * jax.lax.rsqrt(var + LN_EPS) * g + b

    h = layernorm(leaky(x @ p["w_emb"] + p["b_emb"]), p["g0"], p["be0"])
    for l in range(p["w_skip"].shape[0]):
        h = layernorm(h + leaky(h @ p["w_skip"][l] + p["b_skip"][l]),
                      p["g_skip"][l], p["be_skip"][l])
    r = leaky(h @ p["w_reg"] + p["b_reg"])
    return jax.nn.sigmoid(r @ p["w_out"] + p["b_out"])


# ------------------------------ MagnitudeModel ----------------------------- #
def magnitude_model_forward(stacked_params, x_ccc_head, x_ccc_body, x_cco_head,
                            x_cco_body, x_gco_head, x_gco_body):
    """Returns the 6 head outputs in the same order as MagnitudeModel.forward."""
    xs = (x_ccc_head, x_ccc_body, x_cco_head, x_cco_body, x_gco_head, x_gco_body)
    d_pad = stacked_params["w_emb"].shape[1]

    # zero-pad each head's features to the common width and stack: (6, B, d_pad)
    x_stack = jnp.stack([
        jnp.pad(x.astype(jnp.float32), ((0, 0), (0, d_pad - x.shape[1])))
        for x in xs])

    out = fused_magnitude_forward(x_stack, stacked_params)       # (6, B)
    return tuple(out[i][:, None] for i in range(len(xs)))        # six (B, 1)


if __name__ == "__main__":
    # small config consistent with MagnitudeModel(input_dim, dim_hidden,
    # layer_num, dropout, dim_reg)
    input_dim = (12, 10, 14)   # (C_CC, C_CO, G_CO) feature dims
    dim_hidden = 32
    layer_num = 2
    dim_reg = 16
    batch = 8

    key = jax.random.PRNGKey(0)
    k_params, k_data = jax.random.split(key)

    head_dims = {"C_CC_head": input_dim[0], "C_CC_body": input_dim[0],
                 "C_CO_head": input_dim[1], "C_CO_body": input_dim[1],
                 "G_CO_head": input_dim[2], "G_CO_body": input_dim[2]}
    pkeys = jax.random.split(k_params, 6)
    params = {name: init_dlb_params(pk, head_dims[name], dim_hidden,
                                    layer_num, dim_reg)
              for name, pk in zip(HEAD_ORDER, pkeys)}
    stacked = stack_magnitude_params(params)

    dkeys = jax.random.split(k_data, 6)
    x_ccc_head = jax.random.normal(dkeys[0], (batch, input_dim[0]), jnp.float32)
    x_ccc_body = jax.random.normal(dkeys[1], (batch, input_dim[0]), jnp.float32)
    x_cco_head = jax.random.normal(dkeys[2], (batch, input_dim[1]), jnp.float32)
    x_cco_body = jax.random.normal(dkeys[3], (batch, input_dim[1]), jnp.float32)
    x_gco_head = jax.random.normal(dkeys[4], (batch, input_dim[2]), jnp.float32)
    x_gco_body = jax.random.normal(dkeys[5], (batch, input_dim[2]), jnp.float32)

    fwd = jax.jit(magnitude_model_forward)
    outs = jax.block_until_ready(
        fwd(stacked, x_ccc_head, x_ccc_body, x_cco_head,
            x_cco_body, x_gco_head, x_gco_body))

    # correctness check against pure-JAX reference (same order as forward)
    ref_inputs = {"C_CC_head": x_ccc_head, "C_CC_body": x_ccc_body,
                  "C_CO_head": x_cco_head, "C_CO_body": x_cco_body,
                  "G_CO_head": x_gco_head, "G_CO_body": x_gco_body}
    refs = tuple(dlb_reference(ref_inputs[n], params[n]) for n in HEAD_ORDER)
    for o, r in zip(outs, refs):
        assert o.shape == (batch, 1)
        assert jnp.allclose(o, r, atol=2e-5, rtol=2e-5)

    print("KERNEL_OK")
</pallas_src>

<mosaic_0001>
module attributes {stable_mosaic.version = 11 : i64} {
  func.func @_magnitude_kernel(%arg0: memref<6x8x14xf32, #tpu.memory_space<vmem>>, %arg1: memref<6x14x32xf32, #tpu.memory_space<vmem>>, %arg2: memref<6x1x32xf32, #tpu.memory_space<vmem>>, %arg3: memref<6x1x32xf32, #tpu.memory_space<vmem>>, %arg4: memref<6x1x32xf32, #tpu.memory_space<vmem>>, %arg5: memref<6x2x32x32xf32, #tpu.memory_space<vmem>>, %arg6: memref<6x2x1x32xf32, #tpu.memory_space<vmem>>, %arg7: memref<6x2x1x32xf32, #tpu.memory_space<vmem>>, %arg8: memref<6x2x1x32xf32, #tpu.memory_space<vmem>>, %arg9: memref<6x32x16xf32, #tpu.memory_space<vmem>>, %arg10: memref<6x1x16xf32, #tpu.memory_space<vmem>>, %arg11: memref<6x1x16xf32, #tpu.memory_space<vmem>>, %arg12: memref<6x1xf32, #tpu.memory_space<vmem>>, %arg13: memref<6x8xf32, #tpu.memory_space<vmem>>) attributes {dimension_semantics = [], scalar_prefetch = 0 : i64, scratch_operands = 0 : i64, tpu.core_type = #tpu.core_type<tc>} {
    %c0 = arith.constant 0 : index
    %c0_0 = arith.constant 0 : index
    %c0_1 = arith.constant 0 : index
    %0 = vector.load %arg0[%c0, %c0_0, %c0_1] : memref<6x8x14xf32, #tpu.memory_space<vmem>>, vector<6x8x14xf32>
    %c0_2 = arith.constant 0 : index
    %c0_3 = arith.constant 0 : index
    %c0_4 = arith.constant 0 : index
    %c0_5 = arith.constant 0 : index
    %1 = vector.load %arg5[%c0_2, %c0_3, %c0_4, %c0_5] : memref<6x2x32x32xf32, #tpu.memory_space<vmem>>, vector<6x2x32x32xf32>
    %c0_6 = arith.constant 0 : index
    %c0_7 = arith.constant 0 : index
    %c0_8 = arith.constant 0 : index
    %c0_9 = arith.constant 0 : index
    %2 = vector.load %arg6[%c0_6, %c0_7, %c0_8, %c0_9] : memref<6x2x1x32xf32, #tpu.memory_space<vmem>>, vector<6x2x1x32xf32>
    %c0_10 = arith.constant 0 : index
    %c0_11 = arith.constant 0 : index
    %c0_12 = arith.constant 0 : index
    %c0_13 = arith.constant 0 : index
    %3 = vector.load %arg7[%c0_10, %c0_11, %c0_12, %c0_13] : memref<6x2x1x32xf32, #tpu.memory_space<vmem>>, vector<6x2x1x32xf32>
    %c0_14 = arith.constant 0 : index
    %c0_15 = arith.constant 0 : index
    %c0_16 = arith.constant 0 : index
    %c0_17 = arith.constant 0 : index
    %4 = vector.load %arg8[%c0_14, %c0_15, %c0_16, %c0_17] : memref<6x2x1x32xf32, #tpu.memory_space<vmem>>, vector<6x2x1x32xf32>
    %c0_18 = arith.constant 0 : index
    %c0_19 = arith.constant 0 : index
    %c0_20 = arith.constant 0 : index
    %5 = vector.load %arg1[%c0_18, %c0_19, %c0_20] : memref<6x14x32xf32, #tpu.memory_space<vmem>>, vector<6x14x32xf32>
    "tpu.trace_start"() <{level = 10 : i32, message = "hbd,hde->hbe"}> : () -> ()
    %cst = arith.constant dense<0.000000e+00> : vector<6x8x32xf32>
    %6 = tpu.matmul %0, %5, %cst {dimension_numbers = #tpu.dot_dimension_numbers<[2], [1], [1], [2], [0, 0, 0, 1, 1, 2], [0], [0]>} : vector<6x8x14xf32>, vector<6x14x32xf32>, vector<6x8x32xf32> -> vector<6x8x32xf32>
    "tpu.trace_stop"() : () -> ()
    %c0_21 = arith.constant 0 : index
    %c0_22 = arith.constant 0 : index
    %c0_23 = arith.constant 0 : index
    %7 = vector.load %arg2[%c0_21, %c0_22, %c0_23] : memref<6x1x32xf32, #tpu.memory_space<vmem>>, vector<6x1x32xf32>
    %8 = vector.broadcast %7 : vector<6x1x32xf32> to vector<6x8x32xf32>
    %9 = arith.addf %6, %8 : vector<6x8x32xf32>
    %cst_24 = arith.constant 0.00999999977 : f32
    %10 = vector.broadcast %cst_24 : f32 to vector<6x8x32xf32>
    %11 = arith.mulf %10, %9 : vector<6x8x32xf32>
    %12 = arith.maximumf %9, %11 : vector<6x8x32xf32>
    %c0_25 = arith.constant 0 : index
    %c0_26 = arith.constant 0 : index
    %c0_27 = arith.constant 0 : index
    %13 = vector.load %arg3[%c0_25, %c0_26, %c0_27] : memref<6x1x32xf32, #tpu.memory_space<vmem>>, vector<6x1x32xf32>
    %c0_28 = arith.constant 0 : index
    %c0_29 = arith.constant 0 : index
    %c0_30 = arith.constant 0 : index
    %14 = vector.load %arg4[%c0_28, %c0_29, %c0_30] : memref<6x1x32xf32, #tpu.memory_space<vmem>>, vector<6x1x32xf32>
    %cst_31 = arith.constant dense<0.000000e+00> : vector<6x8xf32>
    %15 = vector.multi_reduction <add>, %12, %cst_31 [2] : vector<6x8x32xf32> to vector<6x8xf32>
    %16 = vector.shape_cast %15 : vector<6x8xf32> to vector<6x8x1xf32>
    %cst_32 = arith.constant 3.200000e+01 : f32
    %17 = vector.broadcast %cst_32 : f32 to vector<6x8x1xf32>
    %18 = arith.divf %16, %17 : vector<6x8x1xf32>
    %19 = vector.broadcast %18 : vector<6x8x1xf32> to vector<6x8x32xf32>
    %20 = arith.subf %12, %19 : vector<6x8x32xf32>
    %21 = vector.broadcast %18 : vector<6x8x1xf32> to vector<6x8x32xf32>
    %22 = arith.subf %12, %21 : vector<6x8x32xf32>
    %23 = arith.mulf %20, %22 : vector<6x8x32xf32>
    %cst_33 = arith.constant dense<0.000000e+00> : vector<6x8xf32>
    %24 = vector.multi_reduction <add>, %23, %cst_33 [2] : vector<6x8x32xf32> to vector<6x8xf32>
    %25 = vector.shape_cast %24 : vector<6x8xf32> to vector<6x8x1xf32>
    %cst_34 = arith.constant 3.200000e+01 : f32
    %26 = vector.broadcast %cst_34 : f32 to vector<6x8x1xf32>
    %27 = arith.divf %25, %26 : vector<6x8x1xf32>
    %28 = vector.broadcast %18 : vector<6x8x1xf32> to vector<6x8x32xf32>
    %29 = arith.subf %12, %28 : vector<6x8x32xf32>
    %cst_35 = arith.constant 9.99999974E-6 : f32
    %30 = vector.broadcast %cst_35 : f32 to vector<6x8x1xf32>
    %31 = arith.addf %27, %30 : vector<6x8x1xf32>
    %32 = math.rsqrt %31 : vector<6x8x1xf32>
    %33 = vector.broadcast %32 : vector<6x8x1xf32> to vector<6x8x32xf32>
    %34 = arith.mulf %29, %33 : vector<6x8x32xf32>
    %35 = vector.broadcast %13 : vector<6x1x32xf32> to vector<6x8x32xf32>
    %36 = arith.mulf %34, %35 : vector<6x8x32xf32>
    %37 = vector.broadcast %14 : vector<6x1x32xf32> to vector<6x8x32xf32>
    %38 = arith.addf %36, %37 : vector<6x8x32xf32>
    %39 = vector.extract_strided_slice %1 {offsets = [0, 0, 0, 0], sizes = [6, 1, 32, 32], strides = [1, 1, 1, 1]} : vector<6x2x32x32xf32> to vector<6x1x32x32xf32>
    %40 = vector.shape_cast %39 : vector<6x1x32x32xf32> to vector<6x32x32xf32>
    "tpu.trace_start"() <{level = 10 : i32, message = "hbd,hde->hbe"}> : () -> ()
    %cst_36 = arith.constant dense<0.000000e+00> : vector<6x8x32xf32>
    %41 = tpu.matmul %38, %40, %cst_36 {dimension_numbers = #tpu.dot_dimension_numbers<[2], [1], [1], [2], [0, 0, 0, 1, 1, 2], [0], [0]>} : vector<6x8x32xf32>, vector<6x32x32xf32>, vector<6x8x32xf32> -> vector<6x8x32xf32>
    "tpu.trace_stop"() : () -> ()
    %42 = vector.extract_strided_slice %2 {offsets = [0, 0, 0, 0], sizes = [6, 1, 1, 32], strides = [1, 1, 1, 1]} : vector<6x2x1x32xf32> to vector<6x1x1x32xf32>
    %43 = vector.shape_cast %42 : vector<6x1x1x32xf32> to vector<6x1x32xf32>
    %44 = vector.broadcast %43 : vector<6x1x32xf32> to vector<6x8x32xf32>
    %45 = arith.addf %41, %44 : vector<6x8x32xf32>
    %cst_37 = arith.constant 0.00999999977 : f32
    %46 = vector.broadcast %cst_37 : f32 to vector<6x8x32xf32>
    %47 = arith.mulf %46, %45 : vector<6x8x32xf32>
    %48 = arith.maximumf %45, %47 : vector<6x8x32xf32>
    %49 = arith.addf %38, %48 : vector<6x8x32xf32>
    %50 = vector.extract_strided_slice %3 {offsets = [0, 0, 0, 0], sizes = [6, 1, 1, 32], strides = [1, 1, 1, 1]} : vector<6x2x1x32xf32> to vector<6x1x1x32xf32>
    %51 = vector.shape_cast %50 : vector<6x1x1x32xf32> to vector<6x1x32xf32>
    %52 = vector.extract_strided_slice %4 {offsets = [0, 0, 0, 0], sizes = [6, 1, 1, 32], strides = [1, 1, 1, 1]} : vector<6x2x1x32xf32> to vector<6x1x1x32xf32>
    %53 = vector.shape_cast %52 : vector<6x1x1x32xf32> to vector<6x1x32xf32>
    %cst_38 = arith.constant dense<0.000000e+00> : vector<6x8xf32>
    %54 = vector.multi_reduction <add>, %49, %cst_38 [2] : vector<6x8x32xf32> to vector<6x8xf32>
    %55 = vector.shape_cast %54 : vector<6x8xf32> to vector<6x8x1xf32>
    %cst_39 = arith.constant 3.200000e+01 : f32
    %56 = vector.broadcast %cst_39 : f32 to vector<6x8x1xf32>
    %57 = arith.divf %55, %56 : vector<6x8x1xf32>
    %58 = vector.broadcast %57 : vector<6x8x1xf32> to vector<6x8x32xf32>
    %59 = arith.subf %49, %58 : vector<6x8x32xf32>
    %60 = vector.broadcast %57 : vector<6x8x1xf32> to vector<6x8x32xf32>
    %61 = arith.subf %49, %60 : vector<6x8x32xf32>
    %62 = arith.mulf %59, %61 : vector<6x8x32xf32>
    %cst_40 = arith.constant dense<0.000000e+00> : vector<6x8xf32>
    %63 = vector.multi_reduction <add>, %62, %cst_40 [2] : vector<6x8x32xf32> to vector<6x8xf32>
    %64 = vector.shape_cast %63 : vector<6x8xf32> to vector<6x8x1xf32>
    %cst_41 = arith.constant 3.200000e+01 : f32
    %65 = vector.broadcast %cst_41 : f32 to vector<6x8x1xf32>
    %66 = arith.divf %64, %65 : vector<6x8x1xf32>
    %67 = vector.broadcast %57 : vector<6x8x1xf32> to vector<6x8x32xf32>
    %68 = arith.subf %49, %67 : vector<6x8x32xf32>
    %cst_42 = arith.constant 9.99999974E-6 : f32
    %69 = vector.broadcast %cst_42 : f32 to vector<6x8x1xf32>
    %70 = arith.addf %66, %69 : vector<6x8x1xf32>
    %71 = math.rsqrt %70 : vector<6x8x1xf32>
    %72 = vector.broadcast %71 : vector<6x8x1xf32> to vector<6x8x32xf32>
    %73 = arith.mulf %68, %72 : vector<6x8x32xf32>
    %74 = vector.broadcast %51 : vector<6x1x32xf32> to vector<6x8x32xf32>
    %75 = arith.mulf %73, %74 : vector<6x8x32xf32>
    %76 = vector.broadcast %53 : vector<6x1x32xf32> to vector<6x8x32xf32>
    %77 = arith.addf %75, %76 : vector<6x8x32xf32>
    %78 = vector.extract_strided_slice %1 {offsets = [0, 1, 0, 0], sizes = [6, 1, 32, 32], strides = [1, 1, 1, 1]} : vector<6x2x32x32xf32> to vector<6x1x32x32xf32>
    %79 = vector.shape_cast %78 : vector<6x1x32x32xf32> to vector<6x32x32xf32>
    "tpu.trace_start"() <{level = 10 : i32, message = "hbd,hde->hbe"}> : () -> ()
    %cst_43 = arith.constant dense<0.000000e+00> : vector<6x8x32xf32>
    %80 = tpu.matmul %77, %79, %cst_43 {dimension_numbers = #tpu.dot_dimension_numbers<[2], [1], [1], [2], [0, 0, 0, 1, 1, 2], [0], [0]>} : vector<6x8x32xf32>, vector<6x32x32xf32>, vector<6x8x32xf32> -> vector<6x8x32xf32>
    "tpu.trace_stop"() : () -> ()
    %81 = vector.extract_strided_slice %2 {offsets = [0, 1, 0, 0], sizes = [6, 1, 1, 32], strides = [1, 1, 1, 1]} : vector<6x2x1x32xf32> to vector<6x1x1x32xf32>
    %82 = vector.shape_cast %81 : vector<6x1x1x32xf32> to vector<6x1x32xf32>
    %83 = vector.broadcast %82 : vector<6x1x32xf32> to vector<6x8x32xf32>
    %84 = arith.addf %80, %83 : vector<6x8x32xf32>
    %cst_44 = arith.constant 0.00999999977 : f32
    %85 = vector.broadcast %cst_44 : f32 to vector<6x8x32xf32>
    %86 = arith.mulf %85, %84 : vector<6x8x32xf32>
    %87 = arith.maximumf %84, %86 : vector<6x8x32xf32>
    %88 = arith.addf %77, %87 : vector<6x8x32xf32>
    %89 = vector.extract_strided_slice %3 {offsets = [0, 1, 0, 0], sizes = [6, 1, 1, 32], strides = [1, 1, 1, 1]} : vector<6x2x1x32xf32> to vector<6x1x1x32xf32>
    %90 = vector.shape_cast %89 : vector<6x1x1x32xf32> to vector<6x1x32xf32>
    %91 = vector.extract_strided_slice %4 {offsets = [0, 1, 0, 0], sizes = [6, 1, 1, 32], strides = [1, 1, 1, 1]} : vector<6x2x1x32xf32> to vector<6x1x1x32xf32>
    %92 = vector.shape_cast %91 : vector<6x1x1x32xf32> to vector<6x1x32xf32>
    %cst_45 = arith.constant dense<0.000000e+00> : vector<6x8xf32>
    %93 = vector.multi_reduction <add>, %88, %cst_45 [2] : vector<6x8x32xf32> to vector<6x8xf32>
    %94 = vector.shape_cast %93 : vector<6x8xf32> to vector<6x8x1xf32>
    %cst_46 = arith.constant 3.200000e+01 : f32
    %95 = vector.broadcast %cst_46 : f32 to vector<6x8x1xf32>
    %96 = arith.divf %94, %95 : vector<6x8x1xf32>
    %97 = vector.broadcast %96 : vector<6x8x1xf32> to vector<6x8x32xf32>
    %98 = arith.subf %88, %97 : vector<6x8x32xf32>
    %99 = vector.broadcast %96 : vector<6x8x1xf32> to vector<6x8x32xf32>
    %100 = arith.subf %88, %99 : vector<6x8x32xf32>
    %101 = arith.mulf %98, %100 : vector<6x8x32xf32>
    %cst_47 = arith.constant dense<0.000000e+00> : vector<6x8xf32>
    %102 = vector.multi_reduction <add>, %101, %cst_47 [2] : vector<6x8x32xf32> to vector<6x8xf32>
    %103 = vector.shape_cast %102 : vector<6x8xf32> to vector<6x8x1xf32>
    %cst_48 = arith.constant 3.200000e+01 : f32
    %104 = vector.broadcast %cst_48 : f32 to vector<6x8x1xf32>
    %105 = arith.divf %103, %104 : vector<6x8x1xf32>
    %106 = vector.broadcast %96 : vector<6x8x1xf32> to vector<6x8x32xf32>
    %107 = arith.subf %88, %106 : vector<6x8x32xf32>
    %cst_49 = arith.constant 9.99999974E-6 : f32
    %108 = vector.broadcast %cst_49 : f32 to vector<6x8x1xf32>
    %109 = arith.addf %105, %108 : vector<6x8x1xf32>
    %110 = math.rsqrt %109 : vector<6x8x1xf32>
    %111 = vector.broadcast %110 : vector<6x8x1xf32> to vector<6x8x32xf32>
    %112 = arith.mulf %107, %111 : vector<6x8x32xf32>
    %113 = vector.broadcast %90 : vector<6x1x32xf32> to vector<6x8x32xf32>
    %114 = arith.mulf %112, %113 : vector<6x8x32xf32>
    %115 = vector.broadcast %92 : vector<6x1x32xf32> to vector<6x8x32xf32>
    %116 = arith.addf %114, %115 : vector<6x8x32xf32>
    %c0_50 = arith.constant 0 : index
    %c0_51 = arith.constant 0 : index
    %c0_52 = arith.constant 0 : index
    %117 = vector.load %arg9[%c0_50, %c0_51, %c0_52] : memref<6x32x16xf32, #tpu.memory_space<vmem>>, vector<6x32x16xf32>
    "tpu.trace_start"() <{level = 10 : i32, message = "hbd,hde->hbe"}> : () -> ()
    %cst_53 = arith.constant dense<0.000000e+00> : vector<6x8x16xf32>
    %118 = tpu.matmul %116, %117, %cst_53 {dimension_numbers = #tpu.dot_dimension_numbers<[2], [1], [1], [2], [0, 0, 0, 1, 1, 2], [0], [0]>} : vector<6x8x32xf32>, vector<6x32x16xf32>, vector<6x8x16xf32> -> vector<6x8x16xf32>
    "tpu.trace_stop"() : () -> ()
    %c0_54 = arith.constant 0 : index
    %c0_55 = arith.constant 0 : index
    %c0_56 = arith.constant 0 : index
    %119 = vector.load %arg10[%c0_54, %c0_55, %c0_56] : memref<6x1x16xf32, #tpu.memory_space<vmem>>, vector<6x1x16xf32>
    %120 = vector.broadcast %119 : vector<6x1x16xf32> to vector<6x8x16xf32>
    %121 = arith.addf %118, %120 : vector<6x8x16xf32>
    %cst_57 = arith.constant 0.00999999977 : f32
    %122 = vector.broadcast %cst_57 : f32 to vector<6x8x16xf32>
    %123 = arith.mulf %122, %121 : vector<6x8x16xf32>
    %124 = arith.maximumf %121, %123 : vector<6x8x16xf32>
    %c0_58 = arith.constant 0 : index
    %c0_59 = arith.constant 0 : index
    %c0_60 = arith.constant 0 : index
    %125 = vector.load %arg11[%c0_58, %c0_59, %c0_60] : memref<6x1x16xf32, #tpu.memory_space<vmem>>, vector<6x1x16xf32>
    %126 = vector.broadcast %125 : vector<6x1x16xf32> to vector<6x8x16xf32>
    %127 = arith.mulf %124, %126 : vector<6x8x16xf32>
    %cst_61 = arith.constant dense<0.000000e+00> : vector<6x8xf32>
    %128 = vector.multi_reduction <add>, %127, %cst_61 [2] : vector<6x8x16xf32> to vector<6x8xf32>
    %c0_62 = arith.constant 0 : index
    %c0_63 = arith.constant 0 : index
    %129 = vector.load %arg12[%c0_62, %c0_63] : memref<6x1xf32, #tpu.memory_space<vmem>>, vector<6x1xf32>
    %130 = vector.broadcast %129 : vector<6x1xf32> to vector<6x8xf32>
    %131 = arith.addf %128, %130 : vector<6x8xf32>
    %132 = arith.negf %131 : vector<6x8xf32>
    %133 = math.exp %132 : vector<6x8xf32>
    %cst_64 = arith.constant 1.000000e+00 : f32
    %134 = vector.broadcast %cst_64 : f32 to vector<6x8xf32>
    %135 = arith.addf %134, %133 : vector<6x8xf32>
    %136 = arith.divf %134, %135 : vector<6x8xf32>
    %c0_65 = arith.constant 0 : index
    %c0_66 = arith.constant 0 : index
    %137 = vector.load %arg13[%c0_65, %c0_66] : memref<6x8xf32, #tpu.memory_space<vmem>>, vector<6x8xf32>
    tpu.vector_store %arg13[%c0_65, %c0_66], %136 {strides = array<i32>} : memref<6x8xf32, #tpu.memory_space<vmem>>, vector<6x8xf32>,
    return
  }
}

</mosaic_0001>

<bundles_post_ra>
// kernel: magnitude_model_forward.1
= control target key start
LH: loop header
LB: loop body
LE: loop exit
PB: predicated region body
PF: predicated region fallthrough
CT: control target
= control target key end

     0   :  { %18 = vsyncpa [#allocation3], 0  ;;  %s4576_s0 = inlined_call_operand.vmem [shape: f32[6,8,14], index: 0, kind: input, shape index: {}]   ;;  %s4577_s1 = inlined_call_operand.hbm [shape: f32[6,14,32], index: 1, kind: input, shape index: {}]   ;;  %s4578_s2 = inlined_call_operand.hbm [shape: f32[6,1,32], index: 2, kind: input, shape index: {}]   ;;  %s4579_s3 = inlined_call_operand.hbm [shape: f32[6,1,32], index: 3, kind: input, shape index: {}]   ;;  %s4580_s4 = inlined_call_operand.hbm [shape: f32[6,1,32], index: 4, kind: input, shape index: {}]   ;;  %s4581_s5 = inlined_call_operand.vmem [shape: f32[6,2,32,32], index: 5, kind: input, shape index: {}]   ;;  %s4582_s6 = inlined_call_operand.vmem [shape: f32[6,2,1,32], index: 6, kind: input, shape index: {}]   ;;  %s4583_s7 = inlined_call_operand.vmem [shape: f32[6,2,1,32], index: 7, kind: input, shape index: {}]   ;;  %s4584_s8 = inlined_call_operand.vmem [shape: f32[6,2,1,32], index: 8, kind: input, shape index: {}]   ;;  %s4585_s9 = inlined_call_operand.vmem [shape: f32[6,32,16], index: 9, kind: input, shape index: {}]   ;;  %s4586_s10 = inlined_call_operand.hbm [shape: f32[6,1,16], index: 10, kind: input, shape index: {}]   ;;  %s4587_s11 = inlined_call_operand.hbm [shape: f32[6,1,16], index: 11, kind: input, shape index: {}]   ;;  %s4588_s12 = inlined_call_operand.vmem [shape: f32[6,1], index: 12, kind: input, shape index: {}]   ;;  %s4589_s13 = inlined_call_operand.vmem [shape: f32[6,8], index: 13, kind: output, shape index: {}]  }
   0x1   :  { %19 = vsyncpa [#allocation5], 0 }
   0x2   :  { %20 = vsyncpa [#allocation8], 0 }
   0x3   :  { %21 = vsyncpa [#allocation11], 0  ;;  %s3754_s25 = smov [#allocation4]   ;;  %s3614_s29 = scalar_lea.hbm %s4578_s2, 96 }
   0x4   :  { %s41_s26 = sshll.u32 %s3754_s25, 4  ;;  %p3615_p0 = scmp.ne.s32.totalorder %s4578_s2, %s3614_s29  ;;  %s42_s26 = int_to_ptr.vmem [resolvable:$true] %s41_s26 }
   0x5   :  { %p3618_p1 = scmp.lt.u32.totalorder %s3614_s29, %s4578_s2 }
   0x7   :  { %p3620_p2 = pnand %p3618_p1, %p3615_p0 }
   0x9   :  { %3623 = shalt.err (!%p3620_p2)
}
   0xa   :  { %s3624_s17 = scalar_lea.vmem %s42_s26, 96  ;;  %p3629_p4 = scmp.lt.s32.totalorder %s42_s26, %s42_s26 }
   0xb   :  { %p3625_p3 = scmp.ne.s32.totalorder %s42_s26, %s3624_s17  ;;  %p3630_p5 = scmp.lt.s32.totalorder %s3624_s17, %s3624_s17 }
   0xd   :  { %p3631_p6 = por %p3630_p5, %p3629_p4 }
   0xf   :  { %p3632_p7 = pnand %p3631_p6, %p3625_p3 }
  0x11   :  { %3635 = shalt.err (!%p3632_p7)
}
  0x12   :  { %s3755_s18 = smov 16   ;;  %s3756_s19 = smov 1  }
  0x13   :  { %47 = dma.hbm_to_vmem [thread:$0]  %s4578_s2, 96, %s42_s26, [#allocation5], %s3755_s18, %s3755_s18, %s3756_s19  }
  0x14   :  { %s3757_s22 = smov [#allocation7]   ;;  %s3758_s24 = smov [#allocation2]  }
  0x15   :  { %s65_s23 = sshll.u32 %s3757_s22, 4  ;;  %s29_s25 = sshll.u32 %s3758_s24, 4  ;;  %s66_s23 = int_to_ptr.vmem [resolvable:$true] %s65_s23  ;;  %s30_s25 = int_to_ptr.vmem [resolvable:$true] %s29_s25 }
  0x16   :  { %s3636_s29 = scalar_lea.hbm %s4580_s4, 96 }
  0x17   :  { %p3637_p8 = scmp.ne.s32.totalorder %s4580_s4, %s3636_s29  ;;  %p3640_p9 = scmp.lt.u32.totalorder %s3636_s29, %s4580_s4 }
  0x19   :  { %p3642_p10 = pnand %p3640_p9, %p3637_p8 }
  0x1b   :  { %3645 = shalt.err (!%p3642_p10)
}
  0x1c   :  { %s3646_s2 = scalar_lea.vmem %s66_s23, 96  ;;  %p3651_p12 = scmp.lt.s32.totalorder %s66_s23, %s66_s23 }
  0x1d   :  { %p3647_p11 = scmp.ne.s32.totalorder %s66_s23, %s3646_s2  ;;  %p3652_p13 = scmp.lt.s32.totalorder %s3646_s2, %s3646_s2 }
  0x1f   :  { %p3653_p0 = por %p3652_p13, %p3651_p12 }
  0x21   :  { %p3654_p1 = pnand %p3653_p0, %p3647_p11 }
  0x23   :  { %3657 = shalt.err (!%p3654_p1)
}
  0x24   :  { %71 = dma.hbm_to_vmem [thread:$0]  %s4580_s4, 96, %s66_s23, [#allocation8], %s3755_s18, %s3755_s18, %s3756_s19  }
  0x25   :  { %s3658_s22 = scalar_lea.hbm %s4577_s1, 1536 }
  0x26   :  { %p3659_p2 = scmp.ne.s32.totalorder %s4577_s1, %s3658_s22  ;;  %p3662_p3 = scmp.lt.u32.totalorder %s3658_s22, %s4577_s1 }
  0x28   :  { %p3664_p4 = pnand %p3662_p3, %p3659_p2 }
  0x2a   :  { %3667 = shalt.err (!%p3664_p4)
}
  0x2b   :  { %s3668_s30 = scalar_lea.vmem %s30_s25, 1536  ;;  %p3673_p6 = scmp.lt.s32.totalorder %s30_s25, %s30_s25 }
  0x2c   :  { %p3669_p5 = scmp.ne.s32.totalorder %s30_s25, %s3668_s30  ;;  %p3674_p7 = scmp.lt.s32.totalorder %s3668_s30, %s3668_s30 }
  0x2e   :  { %p3675_p8 = por %p3674_p7, %p3673_p6 }
  0x30   :  { %p3676_p9 = pnand %p3675_p8, %p3669_p5 }
  0x32   :  { %3679 = shalt.err (!%p3676_p9)
}
  0x33   :  { %s3759_s4 = smov 128   ;;  %s3760_s23 = smov 8  }
  0x34   :  { %35 = dma.hbm_to_vmem [thread:$0]  %s4577_s1, 1536, %s30_s25, [#allocation3], %s3759_s4, %s3759_s4, %s3760_s23  }
  0x35   :  { %s3761_s16 = smov [#allocation6]   ;;  %s3762_s26 = smov [#allocation9]  }
  0x36   :  { %s53_s2 = sshll.u32 %s3761_s16, 4  ;;  %s87_s17 = sshll.u32 %s3762_s26, 4  ;;  %s54_s2 = int_to_ptr.vmem [resolvable:$true] %s53_s2  ;;  %s88_s17 = int_to_ptr.vmem [resolvable:$true] %s87_s17 }
  0x37   :  { %s3680_s22 = scalar_lea.hbm %s4579_s3, 96 }
  0x38   :  { %p3681_p10 = scmp.ne.s32.totalorder %s4579_s3, %s3680_s22  ;;  %p3684_p11 = scmp.lt.u32.totalorder %s3680_s22, %s4579_s3 }
  0x3a   :  { %p3686_p12 = pnand %p3684_p11, %p3681_p10 }
  0x3c   :  { %3689 = shalt.err (!%p3686_p12)
}
  0x3d   :  { %s3690_s1 = scalar_lea.vmem %s54_s2, 96  ;;  %p3695_p0 = scmp.lt.s32.totalorder %s54_s2, %s54_s2 }
  0x3e   :  { %p3691_p13 = scmp.ne.s32.totalorder %s54_s2, %s3690_s1  ;;  %p3696_p1 = scmp.lt.s32.totalorder %s3690_s1, %s3690_s1 }
  0x40   :  { %p3697_p2 = por %p3696_p1, %p3695_p0 }
  0x42   :  { %p3698_p3 = pnand %p3697_p2, %p3691_p13 }
  0x44   :  { %3701 = shalt.err (!%p3698_p3)
}
  0x45   :  { %59 = dma.hbm_to_vmem [thread:$0]  %s4579_s3, 96, %s54_s2, [#allocation5], %s3755_s18, %s3755_s18, %s3756_s19  }
  0x46   :  { %s3702_s14 = scalar_lea.hbm %s4586_s10, 96 }
  0x47   :  { %p3703_p4 = scmp.ne.s32.totalorder %s4586_s10, %s3702_s14  ;;  %p3706_p5 = scmp.lt.u32.totalorder %s3702_s14, %s4586_s10 }
  0x49   :  { %p3708_p6 = pnand %p3706_p5, %p3703_p4 }
  0x4b   :  { %3711 = shalt.err (!%p3708_p6)
}
  0x4c   :  { %s3712_s21 = scalar_lea.vmem %s88_s17, 96  ;;  %p3717_p8 = scmp.lt.s32.totalorder %s88_s17, %s88_s17 }
  0x4d   :  { %p3713_p7 = scmp.ne.s32.totalorder %s88_s17, %s3712_s21  ;;  %p3718_p9 = scmp.lt.s32.totalorder %s3712_s21, %s3712_s21 }
  0x4f   :  { %p3719_p10 = por %p3718_p9, %p3717_p8 }
  0x51   :  { %p3720_p11 = pnand %p3719_p10, %p3713_p7 }
  0x53   :  { %3723 = shalt.err (!%p3720_p11)
}
  0x54   :  { %93 = dma.hbm_to_vmem [thread:$0]  %s4586_s10, 96, %s88_s17, [#allocation8], %s3755_s18, %s3755_s18, %s3756_s19  }
  0x55   :  { %s3763_s22 = smov [#allocation10]   ;;  %s3724_s29 = scalar_lea.hbm %s4587_s11, 96 }
  0x56   :  { %s99_s24 = sshll.u32 %s3763_s22, 4  ;;  %p3725_p12 = scmp.ne.s32.totalorder %s4587_s11, %s3724_s29  ;;  %s100_s24 = int_to_ptr.vmem [resolvable:$true] %s99_s24 }
  0x57   :  { %p3728_p13 = scmp.lt.u32.totalorder %s3724_s29, %s4587_s11 }
  0x59   :  { %p3730_p0 = pnand %p3728_p13, %p3725_p12 }
  0x5b   :  { %3733 = shalt.err (!%p3730_p0)
}
  0x5c   :  { %s3734_s23 = scalar_lea.vmem %s100_s24, 96  ;;  %p3739_p2 = scmp.lt.s32.totalorder %s100_s24, %s100_s24 }
  0x5d   :  { %p3735_p1 = scmp.ne.s32.totalorder %s100_s24, %s3734_s23  ;;  %p3740_p3 = scmp.lt.s32.totalorder %s3734_s23, %s3734_s23 }
  0x5f   :  { %p3741_p4 = por %p3740_p3, %p3739_p2 }
  0x61   :  { %p3742_p5 = pnand %p3741_p4, %p3735_p1 }
  0x63   :  { %3745 = shalt.err (!%p3742_p5)
}
  0x64   :  { %105 = dma.hbm_to_vmem [thread:$0]  %s4587_s11, 96, %s100_s24, [#allocation11], %s3755_s18, %s3755_s18, %s3756_s19  }
  0x65   :  { %3746 = dma.done.wait [#allocation3], 1536  }
  0x66   :  { %3747 = vsyncadd [#allocation3], 4294965760 }
  0x67   :  { %3748 = dma.done.wait [#allocation5], 192  }
  0x68   :  { %3749 = vsyncadd [#allocation5], 4294967104 }
  0x69   :  { %3750 = dma.done.wait [#allocation8], 192  }
  0x6a   :  { %3751 = vsyncadd [#allocation8], 4294967104 }
  0x6b   :  { %3752 = dma.done.wait [#allocation11], 96  }
  0x6c   :  { %3753 = vsyncadd [#allocation11], 4294967200  ;;  %v3764_v0 = vmov 0.0|0.0   ;;  %vm3765_vm0 = vmmov 0   ;;  %v3766_v1 = vmov 0.0   ;;  %vm274_vm1 = vcmask 1045504  }
  0x6d   :  { %3405 = vmatprep.subr.bf16.mxu0 %v3764_v0  ;;  %3409 = vmatprep.subr.bf16.mxu1 %v3764_v0  ;;  %v216_v2 = vld [vmem:[#allocation2] sm:$0xff]  ;;  %v217_v3 = vld [vmem:[#allocation2 + $0x8] sm:$0x3f]  ;;  %vm3767_vm2 = vmmov 1   ;;  %v218_v6 = vld [vmem:[#allocation2 + $0x10] sm:$0xff]  ;;  %vm270_vm4 = vcmask 113664  }
  0x6e   :  { %3169 = vmatprep.mubr.msk.f32.mxu0 %vm3765_vm0, %v3766_v1  ;;  %3176 = vmatprep.mubr.msk.f32.mxu1 %vm3765_vm0, %v3766_v1  ;;  %vm3932_vm3 = vmpackc.low %vm274_vm1, %vm3767_vm2  ;;  %v3406_v5 = vpack.c.bf16 %v217_v3, %v216_v2  ;;  %v219_v7 = vld [vmem:[#allocation2 + $0x18] sm:$0x3f]  ;;  %v220_v8 = vld [vmem:[#allocation2 + $0x20] sm:$0xff]  ;;  %vm752_vm5 = vcmask 261120   ;;  %vm2788_vm6 = vcmask 130048   ;;  %vm2934_vm7 = vcmask 1041409  }
  0x6f   :  { %v3410_v9 = vpack.c.bf16 %v219_v7, %v218_v6  ;;  %v221_v10 = vld [vmem:[#allocation2 + $0x28] sm:$0x3f]  ;;  %v126_v11 = vld [vmem:[%s4576_s0] sm:$0xff]  ;;  %v222_v13 = vld [vmem:[#allocation2 + $0x30] sm:$0xff]  ;;  %vm2936_vm8 = vcmask 1042434   ;;  %vm2938_vm9 = vcmask 1043459  }
  0x70   :  { %3408 = vmatpush3.bf16.msk.msra.mxu0 %vm3932_vm3, %v3406_v5  ;;  %v3414_v12 = vpack.c.bf16 %v221_v10, %v220_v8  ;;  %v223_v14 = vld [vmem:[#allocation2 + $0x38] sm:$0x3f]  ;;  %v224_v15 = vld [vmem:[#allocation2 + $0x40] sm:$0xff]  ;;  %v225_v16 = vld [vmem:[#allocation2 + $0x48] sm:$0x3f]  ;;  %vm2940_vm10 = vcmask 1044484  }
  0x71   :  { %3413 = vmatprep.subr.bf16.mxu0 %v3764_v0  ;;  %3412 = vmatpush3.bf16.msk.msra.mxu1 %vm3932_vm3, %v3410_v9  ;;  %v127_v17 = vld [vmem:[%s4576_s0 + $0x8] sm:$0xff]  ;;  %v3418_v18 = vpack.c.bf16 %v223_v14, %v222_v13  ;;  %v226_v19 = vld [vmem:[#allocation2 + $0x50] sm:$0xff]  ;;  %v227_v20 = vld [vmem:[#allocation2 + $0x58] sm:$0x3f]  ;;  %v3422_v22 = vpack.c.bf16 %v225_v16, %v224_v15  ;;  %vm2942_vm11 = vcmask 1045509   ;;  %vm2945_vm12 = vcmask 62464  }
  0x72   :  { %3417 = vmatprep.subr.bf16.mxu1 %v3764_v0  ;;  %v128_v21 = vld [vmem:[%s4576_s0 + $0x10] sm:$0xff]  ;;  %v129_v23 = vld [vmem:[%s4576_s0 + $0x18] sm:$0xff]  ;;  %v3426_v24 = vpack.c.bf16 %v227_v20, %v226_v19  ;;  %v130_v25 = vld [vmem:[%s4576_s0 + $0x20] sm:$0xff] }
  0x73   :  { %3170 = vmatmul.mubr.msk.f32.vlgmr.msra.gmra.mrb[0].mxu0 %vm270_vm4, %v126_v11  ;;  %v131_v26 = vld [vmem:[%s4576_s0 + $0x28] sm:$0xff]  ;;  %v2955_v27 = vld [vmem:[#allocation4] ss:$0 sm:$0xff]  ;;  %v2956_v29 = vld [vmem:[#allocation4 + $0x1] ss:$0 sm:$0xff] }
  0x74   :  { %3416 = vmatpush3.bf16.msk.msra.mxu0 %vm3932_vm3, %v3414_v12  ;;  %3183 = vmatprep.mubr.msk.f32.mxu0 %vm3765_vm0, %v3766_v1  ;;  %v2957_v33 = vld [vmem:[#allocation4 + $0x2] ss:$0 sm:$0xff]  ;;  %v2958_v38 = vld [vmem:[#allocation4 + $0x3] ss:$0 sm:$0xff]  ;;  %v2959_v44 = vld [vmem:[#allocation4 + $0x4] ss:$0 sm:$0xff] }
  0x75   :  { %3177 = vmatmul.mubr.msk.f32.vlgmr.msra.gmra.mrb[0].mxu1 %vm270_vm4, %v127_v17  ;;  %3421 = vmatprep.subr.bf16.mxu0 %v3764_v0  ;;  %v2960_v51 = vld [vmem:[#allocation4 + $0x5] ss:$0 sm:$0xff] }
  0x76   :  { %3420 = vmatpush3.bf16.msk.msra.mxu1 %vm3932_vm3, %v3418_v18  ;;  %3190 = vmatprep.mubr.msk.f32.mxu1 %vm3765_vm0, %v3766_v1 }
  0x77   :  { %3184 = vmatmul.mubr.msk.f32.vlgmr.msra.gmra.mrb[2].mxu0 %vm270_vm4, %v128_v21  ;;  %3425 = vmatprep.subr.bf16.mxu1 %v3764_v0 }
  0x78   :  { %3424 = vmatpush3.bf16.msk.msra.mxu0 %vm3932_vm3, %v3422_v22  ;;  %3197 = vmatprep.mubr.msk.f32.mxu0 %vm3765_vm0, %v3766_v1 }
  0x79   :  { %3191 = vmatmul.mubr.msk.f32.vlgmr.msra.gmra.mrb[2].mxu1 %vm270_vm4, %v129_v23  ;;  %3429 = vmatprep.subr.bf16.mxu0 %v3764_v0 }
  0x7a   :  { %3428 = vmatpush3.bf16.msk.msra.mxu1 %vm3932_vm3, %v3426_v24  ;;  %3204 = vmatprep.mubr.msk.f32.mxu1 %vm3765_vm0, %v3766_v1 }
  0x7b   :  { %3198 = vmatmul.mubr.msk.f32.vlgmr.msra.gmra.mrb[4].mxu0 %vm270_vm4, %v130_v25  ;;  %3435 = vmatprep.subr.bf16.mxu1 %v3764_v0 }
  0x7c   :  { %3215 = vmatprep.mubr.msk.f32.mxu0 %vm3765_vm0, %v3766_v1 }
  0x7d   :  { %3205 = vmatmul.mubr.msk.f32.vlgmr.msra.gmra.mrb[4].mxu1 %vm270_vm4, %v131_v26 }
  0x7e   :  { %3226 = vmatprep.mubr.msk.f32.mxu1 %vm3765_vm0, %v3766_v1 }
 0x146   :  { %v344_v28 = vpop.f32.mrb[0].mxu0 }
 0x147   :  { %v345_v30 = vadd.f32 %v2955_v27, %v344_v28  ;;  %v3171_v31 = vpop.f32.mrb[1].mxu0 }
 0x148   :  { %v420_v32 = vpop.f32.mrb[0].mxu1 }
 0x149   :  { %v728_v34 = vmul.f32 0.01, %v345_v30  ;;  %v421_v35 = vadd.f32 %v2956_v29, %v420_v32  ;;  %v3178_v36 = vpop.f32.mrb[1].mxu1 }
 0x14a   :  { %v496_v37 = vpop.f32.mrb[2].mxu0 }
 0x14b   :  { %v729_v39 = vmul.f32 0.01, %v421_v35  ;;  %v497_v40 = vadd.f32 %v2957_v33, %v496_v37  ;;  %v3185_v41 = vpop.f32.mrb[3].mxu0  ;;  %v734_v42 = vmax.f32 %v345_v30, %v728_v34  ;;  %v132_v37 = vld [vmem:[%s4581_s5] sm:$0xff] }
 0x14c   :  { %v572_v43 = vpop.f32.mrb[2].mxu1  ;;  %v135_v41 = vld [vmem:[%s4581_s5 + $0x18] sm:$0xff] }
 0x14d   :  { %v730_v45 = vmul.f32 0.01, %v497_v40  ;;  %v573_v46 = vadd.f32 %v2958_v38, %v572_v43  ;;  %v753_v47 = vsel %vm752_vm5, %v734_v42, 0.0  ;;  %v3192_v48 = vpop.f32.mrb[3].mxu1  ;;  %v735_v49 = vmax.f32 %v421_v35, %v729_v39  ;;  %v133_v38 = vld [vmem:[%s4581_s5 + $0x8] sm:$0xff] }
 0x14e   :  { %754 = vadd.xlane.f32.xlu0 %v753_v47  ;;  %v648_v50 = vpop.f32.mrb[4].mxu0  ;;  %v3430_v39 = vpack.c.bf16 %v133_v38, %v132_v37  ;;  %v143_v47 = vld [vmem:[%s4581_s5 + $0x58] sm:$0xff]  ;;  %v164_v37 = vld [vmem:[%s4581_s5 + $0x100] sm:$0xff]  ;;  %v165_v38 = vld [vmem:[%s4581_s5 + $0x108] sm:$0xff] }
 0x14f   :  { %v731_v52 = vmul.f32 0.01, %v573_v46  ;;  %v649_v53 = vadd.f32 %v2959_v44, %v648_v50  ;;  %v756_v54 = vsel %vm752_vm5, %v735_v49, 0.0  ;;  %v736_v55 = vmax.f32 %v497_v40, %v730_v45  ;;  %v3199_v56 = vpop.f32.mrb[5].mxu0  ;;  %v134_v40 = vld [vmem:[%s4581_s5 + $0x10] sm:$0xff]  ;;  %v141_v44 = vld [vmem:[%s4581_s5 + $0x48] sm:$0xff] }
 0x150   :  { %v724_v57 = vpop.f32.mrb[4].mxu1  ;;  %3431 = vmatpush3.bf16.msra.mxu0 %v3430_v39  ;;  %v3433_v43 = vpack.c.bf16 %v135_v41, %v134_v40  ;;  %v2981_v40 = vld [vmem:[#allocation7 + $0x2] ss:$0 sm:$0xff] }
 0x151   :  { %v732_v58 = vmul.f32 0.01, %v649_v53  ;;  %v725_v59 = vadd.f32 %v2960_v51, %v724_v57  ;;  %v759_v60 = vsel %vm752_vm5, %v736_v55, 0.0  ;;  %v737_v61 = vmax.f32 %v573_v46, %v731_v52  ;;  %v3206_v62 = vpop.f32.mrb[5].mxu1  ;;  %3432 = vmatprep.subr.bf16.mxu0 %v3764_v0  ;;  %v142_v46 = vld [vmem:[%s4581_s5 + $0x50] sm:$0xff] }
 0x152   :  { %757 = vadd.xlane.f32.xlu0 %v756_v54  ;;  %760 = vadd.xlane.f32.xlu1 %v759_v60  ;;  %v3439_v48 = vpack.c.bf16 %v143_v47, %v142_v46  ;;  %v167_v47 = vld [vmem:[%s4581_s5 + $0x118] sm:$0xff] }
 0x153   :  { %v733_v63 = vmul.f32 0.01, %v725_v59  ;;  %v762_v2 = vsel %vm752_vm5, %v737_v61, 0.0  ;;  %v738_v3 = vmax.f32 %v649_v53, %v732_v58 }
 0x154   :  { %3434 = vmatpush3.bf16.msra.mxu0 %v3433_v43  ;;  %v166_v43 = vld [vmem:[%s4581_s5 + $0x110] sm:$0xff] }
 0x155   :  { %v765_v4 = vsel %vm752_vm5, %v738_v3, 0.0  ;;  %v739_v5 = vmax.f32 %v725_v59, %v733_v63  ;;  %3441 = vmatprep.subr.bf16.mxu0 %v3764_v0 }
 0x156   :  { %763 = vadd.xlane.f32.xlu1 %v762_v2  ;;  %766 = vadd.xlane.f32.xlu0 %v765_v4 }
 0x157   :  { %v768_v6 = vsel %vm752_vm5, %v739_v5, 0.0 }
 0x15a   :  { %769 = vadd.xlane.f32.xlu1 %v768_v6  ;;  %v2973_v6 = vld [vmem:[#allocation6] ss:$0 sm:$0xff] }
 0x1db   :  { %v755_v7 = vpop.xlane.xlu0 %754 }
 0x1dc   :  { %v772_v8 = vmul.f32 0.03125, %v755_v7 }
 0x1de   :  { %v3996_v9 = vsub.f32 %v734_v42, %v772_v8  ;;  %v140_v42 = vld [vmem:[%s4581_s5 + $0x40] sm:$0xff] }
 0x1df   :  { %v758_v10 = vpop.xlane.xlu0 %757  ;;  %v761_v11 = vpop.xlane.xlu1 %760  ;;  %v3436_v45 = vpack.c.bf16 %v141_v44, %v140_v42  ;;  %v148_v8 = vld [vmem:[%s4581_s5 + $0x80] sm:$0xff]  ;;  %v3454_v42 = vpack.c.bf16 %v165_v38, %v164_v37 }
 0x1e0   :  { %v773_v12 = vmul.f32 0.03125, %v758_v10  ;;  %v774_v13 = vmul.f32 0.03125, %v761_v11  ;;  %v784_v14 = vmul.f32 %v3996_v9, %v3996_v9  ;;  %v149_v10 = vld [vmem:[%s4581_s5 + $0x88] sm:$0xff] }
 0x1e1   :  { %3437 = vmatpush3.bf16.msra.mxu1 %v3436_v45  ;;  %v2979_v11 = vld [vmem:[#allocation7] ss:$0 sm:$0xff] }
 0x1e2   :  { %v4000_v15 = vsub.f32 %v735_v49, %v773_v12  ;;  %v4002_v16 = vsub.f32 %v736_v55, %v774_v13  ;;  %v790_v17 = vsel %vm752_vm5, %v784_v14, 0.0  ;;  %3438 = vmatprep.subr.bf16.mxu1 %v3764_v0  ;;  %v3442_v14 = vpack.c.bf16 %v149_v10, %v148_v8 }
 0x1e3   :  { %v764_v18 = vpop.xlane.xlu1 %763  ;;  %791 = vadd.xlane.f32.xlu0 %v790_v17  ;;  %v767_v19 = vpop.xlane.xlu0 %766  ;;  %v2974_v17 = vld [vmem:[#allocation6 + $0x1] ss:$0 sm:$0xff] }
 0x1e4   :  { %v775_v20 = vmul.f32 0.03125, %v764_v18  ;;  %v776_v21 = vmul.f32 0.03125, %v767_v19  ;;  %v785_v22 = vmul.f32 %v4000_v15, %v4000_v15  ;;  %v786_v23 = vmul.f32 %v4002_v16, %v4002_v16  ;;  %v150_v18 = vld [vmem:[%s4581_s5 + $0x90] sm:$0xff] }
 0x1e5   :  { %3440 = vmatpush3.bf16.msra.mxu1 %v3439_v48  ;;  %v172_v48 = vld [vmem:[%s4581_s5 + $0x140] sm:$0xff] }
 0x1e6   :  { %v4009_v24 = vsub.f32 %v737_v61, %v775_v20  ;;  %v4011_v25 = vsub.f32 %v738_v3, %v776_v21  ;;  %v793_v26 = vsel %vm752_vm5, %v785_v22, 0.0  ;;  %v796_v27 = vsel %vm752_vm5, %v786_v23, 0.0  ;;  %3447 = vmatprep.subr.bf16.mxu1 %v3764_v0  ;;  %v151_v21 = vld [vmem:[%s4581_s5 + $0x98] sm:$0xff]  ;;  %v156_v22 = vld [vmem:[%s4581_s5 + $0xc0] sm:$0xff]  ;;  %v157_v23 = vld [vmem:[%s4581_s5 + $0xc8] sm:$0xff] }
 0x1e7   :  { %794 = vadd.xlane.f32.xlu1 %v793_v26  ;;  %v770_v28 = vpop.xlane.xlu1 %769  ;;  %797 = vadd.xlane.f32.xlu0 %v796_v27  ;;  %v2980_v27 = vld [vmem:[#allocation7 + $0x1] ss:$0 sm:$0xff] }
 0x1e8   :  { %v777_v29 = vmul.f32 0.03125, %v770_v28  ;;  %v787_v30 = vmul.f32 %v4009_v24, %v4009_v24  ;;  %v788_v31 = vmul.f32 %v4011_v25, %v4011_v25  ;;  %v2975_v28 = vld [vmem:[#allocation6 + $0x2] ss:$0 sm:$0xff] }
 0x1ea   :  { %v4019_v32 = vsub.f32 %v739_v5, %v777_v29  ;;  %v799_v33 = vsel %vm752_vm5, %v787_v30, 0.0  ;;  %v802_v34 = vsel %vm752_vm5, %v788_v31, 0.0  ;;  %v3445_v30 = vpack.c.bf16 %v151_v21, %v150_v18 }
 0x1eb   :  { %800 = vadd.xlane.f32.xlu1 %v799_v33  ;;  %803 = vadd.xlane.f32.xlu0 %v802_v34  ;;  %v3448_v31 = vpack.c.bf16 %v157_v23, %v156_v22  ;;  %v158_v33 = vld [vmem:[%s4581_s5 + $0xd0] sm:$0xff] }
 0x1ec   :  { %v789_v35 = vmul.f32 %v4019_v32, %v4019_v32 }
 0x1ee   :  { %v805_v36 = vsel %vm752_vm5, %v789_v35, 0.0 }
 0x1ef   :  { %806 = vadd.xlane.f32.xlu1 %v805_v36  ;;  %v159_v36 = vld [vmem:[%s4581_s5 + $0xd8] sm:$0xff] }
 0x1f0   :  { %v3451_v41 = vpack.c.bf16 %v159_v36, %v158_v33  ;;  %v2989_v33 = vld [vmem:[%s4582_s6 + $0x8] ss:$0 sm:$0xff] }
 0x270   :  { %v792_v49 = vpop.xlane.xlu0 %791 }
 0x271   :  { %v808_v50 = vmul.f32 0.03125, %v792_v49  ;;  %v173_v49 = vld [vmem:[%s4581_s5 + $0x148] sm:$0xff] }
 0x273   :  { %v814_v51 = vadd.f32 1e-05, %v808_v50  ;;  %v2982_v50 = vld [vmem:[#allocation7 + $0x3] ss:$0 sm:$0xff] }
 0x274   :  { %v795_v52 = vpop.xlane.xlu1 %794  ;;  %v798_v53 = vpop.xlane.xlu0 %797 }
 0x275   :  { %3554 = vrsqrt.f32 %v814_v51  ;;  %v809_v54 = vmul.f32 0.03125, %v795_v52  ;;  %v810_v55 = vmul.f32 0.03125, %v798_v53  ;;  %v2977_v51 = vld [vmem:[#allocation6 + $0x4] ss:$0 sm:$0xff]  ;;  %v3457_v52 = vpack.c.bf16 %v167_v47, %v166_v43 }
 0x276   :  { %v3460_v53 = vpack.c.bf16 %v173_v49, %v172_v48 }
 0x277   :  { %v815_v56 = vadd.f32 1e-05, %v809_v54  ;;  %v816_v57 = vadd.f32 1e-05, %v810_v55 }
 0x278   :  { %v801_v58 = vpop.xlane.xlu1 %800  ;;  %v804_v59 = vpop.xlane.xlu0 %803 }
 0x279   :  { %3556 = vrsqrt.f32 %v815_v56  ;;  %v811_v60 = vmul.f32 0.03125, %v801_v58  ;;  %v812_v61 = vmul.f32 0.03125, %v804_v59  ;;  %v175_v58 = vld [vmem:[%s4581_s5 + $0x158] sm:$0xff]  ;;  %v2983_v59 = vld [vmem:[#allocation7 + $0x4] ss:$0 sm:$0xff] }
 0x27a   :  { %3558 = vrsqrt.f32 %v816_v57  ;;  %v174_v57 = vld [vmem:[%s4581_s5 + $0x150] sm:$0xff] }
 0x27b   :  { %v817_v62 = vadd.f32 1e-05, %v811_v60  ;;  %v818_v63 = vadd.f32 1e-05, %v812_v61  ;;  %v3463_v60 = vpack.c.bf16 %v175_v58, %v174_v57 }
 0x27c   :  { %v807_v2 = vpop.xlane.xlu1 %806 }
 0x27d   :  { %3560 = vrsqrt.f32 %v817_v62  ;;  %v813_v3 = vmul.f32 0.03125, %v807_v2 }
 0x27e   :  { %3562 = vrsqrt.f32 %v818_v63  ;;  %v2984_v63 = vld [vmem:[#allocation7 + $0x5] ss:$0 sm:$0xff] }
 0x27f   :  { %v3555_v4 = vpop.eup %3554  ;;  %v819_v5 = vadd.f32 1e-05, %v813_v3  ;;  %v2985_v3 = vld [vmem:[%s4582_s6] ss:$0 sm:$0xff] }
 0x280   :  { %v826_v7 = vmul.f32 %v3555_v4, %v3996_v9 }
 0x281   :  { %3564 = vrsqrt.f32 %v819_v5 }
 0x282   :  { %v868_v12 = vmul.f32 %v2973_v6, %v826_v7  ;;  %v2986_v7 = vld [vmem:[%s4582_s6 + $0x2] ss:$0 sm:$0xff] }
 0x283   :  { %v3557_v13 = vpop.eup %3556 }
 0x284   :  { %v3559_v19 = vpop.eup %3558  ;;  %v827_v9 = vmul.f32 %v3557_v13, %v4000_v15  ;;  %v4065_v20 = vadd.f32 %v2979_v11, %v868_v12 }
 0x285   :  { %v828_v26 = vmul.f32 %v3559_v19, %v4002_v16 }
 0x286   :  { %3216 = vmatmul.mubr.msk.f32.vlgmr.msra.gmra.mrb[6].mxu0 %vm752_vm5, %v4065_v20  ;;  %v869_v15 = vmul.f32 %v2974_v17, %v827_v9 }
 0x287   :  { %v3561_v29 = vpop.eup %3560  ;;  %3443 = vmatpush3.bf16.msra.mxu0 %v3442_v14  ;;  %3237 = vmatprep.mubr.msk.f32.mxu0 %vm3765_vm0, %v3766_v1  ;;  %v870_v35 = vmul.f32 %v2975_v28, %v828_v26  ;;  %v2987_v14 = vld [vmem:[%s4582_s6 + $0x4] ss:$0 sm:$0xff]  ;;  %v2988_v26 = vld [vmem:[%s4582_s6 + $0x6] ss:$0 sm:$0xff] }
 0x288   :  { %v829_v34 = vmul.f32 %v3561_v29, %v4009_v24  ;;  %3444 = vmatprep.subr.bf16.mxu0 %v3764_v0  ;;  %v4086_v16 = vadd.f32 %v2980_v27, %v869_v15  ;;  %v3563_v39 = vpop.eup %3562  ;;  %v2976_v24 = vld [vmem:[#allocation6 + $0x3] ss:$0 sm:$0xff] }
 0x289   :  { %v830_v44 = vmul.f32 %v3563_v39, %v4011_v25  ;;  %v4103_v45 = vadd.f32 %v2981_v40, %v870_v35  ;;  %v2990_v40 = vld [vmem:[%s4582_s6 + $0xa] ss:$0 sm:$0xff] }
 0x28a   :  { %3227 = vmatmul.mubr.msk.f32.vlgmr.msra.gmra.mrb[6].mxu1 %vm752_vm5, %v4086_v16  ;;  %v871_v46 = vmul.f32 %v2976_v24, %v829_v34 }
 0x28b   :  { %3446 = vmatpush3.bf16.msra.mxu0 %v3445_v30  ;;  %3449 = vmatpush3.bf16.msra.mxu1 %v3448_v31  ;;  %v3565_v25 = vpop.eup %3564  ;;  %v872_v56 = vmul.f32 %v2977_v51, %v830_v44 }
 0x28c   :  { %3450 = vmatprep.subr.bf16.mxu1 %v3764_v0  ;;  %3453 = vmatprep.subr.bf16.mxu0 %v3764_v0  ;;  %v831_v54 = vmul.f32 %v3565_v25, %v4019_v32  ;;  %v4121_v55 = vadd.f32 %v2982_v50, %v871_v46  ;;  %v2978_v32 = vld [vmem:[#allocation6 + $0x5] ss:$0 sm:$0xff] }
 0x28d   :  { %3248 = vmatprep.mubr.msk.f32.mxu1 %vm3765_vm0, %v3766_v1  ;;  %v914_v61 = vadd.f32 %v2983_v59, %v872_v56 }
 0x28e   :  { %3238 = vmatmul.mubr.msk.f32.vlgmr.msra.gmra.mrb[8].mxu0 %vm752_vm5, %v4103_v45  ;;  %v873_v62 = vmul.f32 %v2978_v32, %v831_v54 }
 0x28f   :  { %3452 = vmatpush3.bf16.msra.mxu1 %v3451_v41  ;;  %3455 = vmatpush3.bf16.msra.mxu0 %v3454_v42 }
 0x290   :  { %3456 = vmatprep.subr.bf16.mxu0 %v3764_v0  ;;  %3459 = vmatprep.subr.bf16.mxu1 %v3764_v0  ;;  %v915_v2 = vadd.f32 %v2984_v63, %v873_v62 }
 0x291   :  { %3259 = vmatprep.mubr.msk.f32.mxu0 %vm3765_vm0, %v3766_v1 }
 0x292   :  { %3249 = vmatmul.mubr.msk.f32.vlgmr.msra.gmra.mrb[8].mxu1 %vm752_vm5, %v4121_v55 }
 0x293   :  { %3458 = vmatpush3.bf16.msra.mxu0 %v3457_v52  ;;  %3461 = vmatpush3.bf16.msra.mxu1 %v3460_v53 }
 0x294   :  { %3462 = vmatprep.subr.bf16.mxu1 %v3764_v0  ;;  %3270 = vmatprep.mubr.msk.f32.mxu1 %vm3765_vm0, %v3766_v1 }
 0x295   :  { %3465 = vmatprep.subr.bf16.mxu0 %v3764_v0 }
 0x296   :  { %3260 = vmatmul.mubr.msk.f32.vlgmr.msra.gmra.mrb[10].mxu0 %vm752_vm5, %v914_v61 }
 0x297   :  { %3464 = vmatpush3.bf16.msra.mxu1 %v3463_v60  ;;  %3281 = vmatprep.mubr.msk.f32.mxu0 %vm3765_vm0, %v3766_v1 }
 0x298   :  { %3471 = vmatprep.subr.bf16.mxu1 %v3764_v0 }
 0x29a   :  { %3271 = vmatmul.mubr.msk.f32.vlgmr.msra.gmra.mrb[10].mxu1 %vm752_vm5, %v915_v2 }
 0x29b   :  { %3292 = vmatprep.mubr.msk.f32.mxu1 %vm3765_vm0, %v3766_v1 }
 0x359   :  { %v1021_v4 = vpop.f32.mrb[6].mxu0 }
 0x35a   :  { %v1022_v5 = vadd.f32 %v2985_v3, %v1021_v4  ;;  %v3217_v6 = vpop.f32.mrb[7].mxu0 }
 0x35c   :  { %v1390_v8 = vmul.f32 0.01, %v1022_v5 }
 0x35d   :  { %v1094_v10 = vpop.f32.mrb[6].mxu1 }
 0x35e   :  { %v1396_v11 = vmax.f32 %v1022_v5, %v1390_v8  ;;  %v1095_v12 = vadd.f32 %v2986_v7, %v1094_v10  ;;  %v3228_v13 = vpop.f32.mrb[7].mxu1 }
 0x360   :  { %v1391_v17 = vmul.f32 0.01, %v1095_v12  ;;  %v1402_v18 = vadd.f32 %v1396_v11, %v4065_v20 }
 0x361   :  { %v1167_v19 = vpop.f32.mrb[8].mxu0 }
 0x362   :  { %v1397_v9 = vmax.f32 %v1095_v12, %v1391_v17  ;;  %v1168_v21 = vadd.f32 %v2987_v14, %v1167_v19  ;;  %v3239_v22 = vpop.f32.mrb[9].mxu0  ;;  %v1408_v23 = vsel %vm752_vm5, %v1402_v18, 0.0 }
 0x363   :  { %1409 = vadd.xlane.f32.xlu0 %v1408_v23  ;;  %v136_v22 = vld [vmem:[%s4581_s5 + $0x20] sm:$0xff]  ;;  %v137_v23 = vld [vmem:[%s4581_s5 + $0x28] sm:$0xff] }
 0x364   :  { %v1392_v27 = vmul.f32 0.01, %v1168_v21  ;;  %v1403_v28 = vadd.f32 %v1397_v9, %v4086_v16 }
 0x365   :  { %v1240_v15 = vpop.f32.mrb[8].mxu1 }
 0x366   :  { %v1398_v29 = vmax.f32 %v1168_v21, %v1392_v27  ;;  %v1241_v30 = vadd.f32 %v2988_v26, %v1240_v15  ;;  %v3250_v31 = vpop.f32.mrb[9].mxu1  ;;  %v1411_v20 = vsel %vm752_vm5, %v1403_v28, 0.0  ;;  %v3466_v26 = vpack.c.bf16 %v137_v23, %v136_v22  ;;  %v138_v27 = vld [vmem:[%s4581_s5 + $0x30] sm:$0xff]  ;;  %v144_v15 = vld [vmem:[%s4581_s5 + $0x60] sm:$0xff] }
 0x367   :  { %1412 = vadd.xlane.f32.xlu1 %v1411_v20  ;;  %v146_v20 = vld [vmem:[%s4581_s5 + $0x70] sm:$0xff] }
 0x368   :  { %v1393_v34 = vmul.f32 0.01, %v1241_v30  ;;  %v1404_v35 = vadd.f32 %v1398_v29, %v4103_v45  ;;  %3467 = vmatpush3.bf16.msra.mxu0 %v3466_v26 }
 0x369   :  { %v1313_v36 = vpop.f32.mrb[10].mxu0  ;;  %3468 = vmatprep.subr.bf16.mxu0 %v3764_v0 }
 0x36a   :  { %v1399_v37 = vmax.f32 %v1241_v30, %v1393_v34  ;;  %v1314_v38 = vadd.f32 %v2989_v33, %v1313_v36  ;;  %v3261_v39 = vpop.f32.mrb[11].mxu0  ;;  %v1414_v16 = vsel %vm752_vm5, %v1404_v35, 0.0  ;;  %v145_v30 = vld [vmem:[%s4581_s5 + $0x68] sm:$0xff]  ;;  %v147_v33 = vld [vmem:[%s4581_s5 + $0x78] sm:$0xff] }
 0x36b   :  { %1415 = vadd.xlane.f32.xlu0 %v1414_v16  ;;  %v3472_v31 = vpack.c.bf16 %v145_v30, %v144_v15  ;;  %v3475_v34 = vpack.c.bf16 %v147_v33, %v146_v20  ;;  %v170_v15 = vld [vmem:[%s4581_s5 + $0x130] sm:$0xff]  ;;  %v176_v20 = vld [vmem:[%s4581_s5 + $0x160] sm:$0xff]  ;;  %v177_v33 = vld [vmem:[%s4581_s5 + $0x168] sm:$0xff] }
 0x36c   :  { %v1394_v24 = vmul.f32 0.01, %v1314_v38  ;;  %v1405_v41 = vadd.f32 %v1399_v37, %v4121_v55 }
 0x36d   :  { %v1386_v42 = vpop.f32.mrb[10].mxu1  ;;  %3473 = vmatpush3.bf16.msra.mxu1 %v3472_v31  ;;  %v171_v31 = vld [vmem:[%s4581_s5 + $0x138] sm:$0xff] }
 0x36e   :  { %v1400_v43 = vmax.f32 %v1314_v38, %v1394_v24  ;;  %v1387_v44 = vadd.f32 %v2990_v40, %v1386_v42  ;;  %v3272_v46 = vpop.f32.mrb[11].mxu1  ;;  %v1417_v45 = vsel %vm752_vm5, %v1405_v41, 0.0  ;;  %3474 = vmatprep.subr.bf16.mxu1 %v3764_v0 }
 0x36f   :  { %1418 = vadd.xlane.f32.xlu1 %v1417_v45  ;;  %v2997_v45 = vld [vmem:[%s4583_s7] ss:$0 sm:$0xff] }
 0x370   :  { %v1395_v47 = vmul.f32 0.01, %v1387_v44  ;;  %v1406_v48 = vadd.f32 %v1400_v43, %v914_v61 }
 0x371   :  { %3476 = vmatpush3.bf16.msra.mxu1 %v3475_v34 }
 0x372   :  { %v1401_v49 = vmax.f32 %v1387_v44, %v1395_v47  ;;  %v1420_v25 = vsel %vm752_vm5, %v1406_v48, 0.0  ;;  %3483 = vmatprep.subr.bf16.mxu1 %v3764_v0 }
 0x373   :  { %1421 = vadd.xlane.f32.xlu0 %v1420_v25  ;;  %v153_v25 = vld [vmem:[%s4581_s5 + $0xa8] sm:$0xff] }
 0x374   :  { %v1407_v50 = vadd.f32 %v1401_v49, %v915_v2  ;;  %v152_v49 = vld [vmem:[%s4581_s5 + $0xa0] sm:$0xff] }
 0x376   :  { %v1423_v51 = vsel %vm752_vm5, %v1407_v50, 0.0 }
 0x377   :  { %1424 = vadd.xlane.f32.xlu1 %v1423_v51  ;;  %v3003_v51 = vld [vmem:[%s4584_s8] ss:$0 sm:$0xff] }
 0x3f0   :  { %v1410_v52 = vpop.xlane.xlu0 %1409 }
 0x3f1   :  { %v1426_v53 = vmul.f32 0.03125, %v1410_v52 }
 0x3f3   :  { %v4174_v54 = vsub.f32 %v1402_v18, %v1426_v53 }
 0x3f4   :  { %v1413_v55 = vpop.xlane.xlu1 %1412 }
 0x3f5   :  { %v1427_v56 = vmul.f32 0.03125, %v1413_v55  ;;  %v1438_v57 = vmul.f32 %v4174_v54, %v4174_v54 }
 0x3f7   :  { %v4178_v58 = vsub.f32 %v1403_v28, %v1427_v56  ;;  %v1444_v59 = vsel %vm752_vm5, %v1438_v57, 0.0  ;;  %v139_v28 = vld [vmem:[%s4581_s5 + $0x38] sm:$0xff]  ;;  %v3478_v56 = vpack.c.bf16 %v153_v25, %v152_v49  ;;  %v154_v57 = vld [vmem:[%s4581_s5 + $0xb0] sm:$0xff]  ;;  %v3009_v49 = vld [vmem:[%s4582_s6 + $0x1] ss:$0 sm:$0xff] }
 0x3f8   :  { %v1416_v32 = vpop.xlane.xlu0 %1415  ;;  %1445 = vadd.xlane.f32.xlu0 %v1444_v59  ;;  %v3469_v29 = vpack.c.bf16 %v139_v28, %v138_v27  ;;  %v3000_v28 = vld [vmem:[%s4583_s7 + $0x6] ss:$0 sm:$0xff] }
 0x3f9   :  { %v1428_v60 = vmul.f32 0.03125, %v1416_v32  ;;  %v1439_v61 = vmul.f32 %v4178_v58, %v4178_v58 }
 0x3fa   :  { %3470 = vmatpush3.bf16.msra.mxu0 %v3469_v29 }
 0x3fb   :  { %v4183_v62 = vsub.f32 %v1404_v35, %v1428_v60  ;;  %v1447_v63 = vsel %vm752_vm5, %v1439_v61, 0.0  ;;  %3477 = vmatprep.subr.bf16.mxu0 %v3764_v0  ;;  %v155_v61 = vld [vmem:[%s4581_s5 + $0xb8] sm:$0xff] }
 0x3fc   :  { %v1419_v2 = vpop.xlane.xlu1 %1418  ;;  %1448 = vadd.xlane.f32.xlu1 %v1447_v63  ;;  %v160_v63 = vld [vmem:[%s4581_s5 + $0xe0] sm:$0xff] }
 0x3fd   :  { %v1429_v3 = vmul.f32 0.03125, %v1419_v2  ;;  %v1440_v4 = vmul.f32 %v4183_v62, %v4183_v62  ;;  %v161_v2 = vld [vmem:[%s4581_s5 + $0xe8] sm:$0xff] }
 0x3ff   :  { %v4188_v5 = vsub.f32 %v1405_v41, %v1429_v3  ;;  %v1450_v6 = vsel %vm752_vm5, %v1440_v4, 0.0 }
 0x400   :  { %1451 = vadd.xlane.f32.xlu0 %v1450_v6  ;;  %v1422_v7 = vpop.xlane.xlu0 %1421 }
 0x401   :  { %v1430_v8 = vmul.f32 0.03125, %v1422_v7  ;;  %v1441_v10 = vmul.f32 %v4188_v5, %v4188_v5 }
 0x403   :  { %v4193_v11 = vsub.f32 %v1406_v48, %v1430_v8  ;;  %v1453_v12 = vsel %vm752_vm5, %v1441_v10, 0.0  ;;  %v3481_v8 = vpack.c.bf16 %v155_v61, %v154_v57  ;;  %v3484_v10 = vpack.c.bf16 %v161_v2, %v160_v63 }
 0x404   :  { %1454 = vadd.xlane.f32.xlu1 %v1453_v12  ;;  %v1425_v13 = vpop.xlane.xlu1 %1424  ;;  %v2999_v12 = vld [vmem:[%s4583_s7 + $0x4] ss:$0 sm:$0xff] }
 0x405   :  { %v1431_v14 = vmul.f32 0.03125, %v1425_v13  ;;  %v1442_v17 = vmul.f32 %v4193_v11, %v4193_v11  ;;  %v162_v13 = vld [vmem:[%s4581_s5 + $0xf0] sm:$0xff] }
 0x407   :  { %v4198_v18 = vsub.f32 %v1407_v50, %v1431_v14  ;;  %v1456_v19 = vsel %vm752_vm5, %v1442_v17, 0.0 }
 0x408   :  { %1457 = vadd.xlane.f32.xlu0 %v1456_v19  ;;  %v163_v19 = vld [vmem:[%s4581_s5 + $0xf8] sm:$0xff] }
 0x409   :  { %v1443_v9 = vmul.f32 %v4198_v18, %v4198_v18  ;;  %v3487_v26 = vpack.c.bf16 %v163_v19, %v162_v13  ;;  %v3013_v19 = vld [vmem:[%s4582_s6 + $0x9] ss:$0 sm:$0xff] }
 0x40b   :  { %v1459_v21 = vsel %vm752_vm5, %v1443_v9, 0.0  ;;  %v168_v9 = vld [vmem:[%s4581_s5 + $0x120] sm:$0xff] }
 0x40c   :  { %1460 = vadd.xlane.f32.xlu1 %v1459_v21  ;;  %v169_v21 = vld [vmem:[%s4581_s5 + $0x128] sm:$0xff] }
 0x40d   :  { %v3490_v27 = vpack.c.bf16 %v169_v21, %v168_v9 }
 0x485   :  { %v1446_v35 = vpop.xlane.xlu0 %1445 }
 0x486   :  { %v1462_v36 = vmul.f32 0.03125, %v1446_v35 }
 0x488   :  { %v1468_v37 = vadd.f32 1e-05, %v1462_v36  ;;  %v3493_v36 = vpack.c.bf16 %v171_v31, %v170_v15 }
 0x489   :  { %v1449_v38 = vpop.xlane.xlu1 %1448 }
 0x48a   :  { %3566 = vrsqrt.f32 %v1468_v37  ;;  %v1463_v39 = vmul.f32 0.03125, %v1449_v38  ;;  %v3496_v37 = vpack.c.bf16 %v177_v33, %v176_v20  ;;  %v3001_v38 = vld [vmem:[%s4583_s7 + $0x8] ss:$0 sm:$0xff] }
 0x48c   :  { %v1469_v16 = vadd.f32 1e-05, %v1463_v39 }
 0x48d   :  { %v1452_v40 = vpop.xlane.xlu0 %1451 }
 0x48e   :  { %3568 = vrsqrt.f32 %v1469_v16  ;;  %v1464_v24 = vmul.f32 0.03125, %v1452_v40  ;;  %v178_v40 = vld [vmem:[%s4581_s5 + $0x170] sm:$0xff] }
 0x490   :  { %v1470_v41 = vadd.f32 1e-05, %v1464_v24  ;;  %v179_v24 = vld [vmem:[%s4581_s5 + $0x178] sm:$0xff] }
 0x491   :  { %v1455_v42 = vpop.xlane.xlu1 %1454 }
 0x492   :  { %3570 = vrsqrt.f32 %v1470_v41  ;;  %v1465_v43 = vmul.f32 0.03125, %v1455_v42 }
 0x494   :  { %v3567_v44 = vpop.eup %3566  ;;  %v1471_v46 = vadd.f32 1e-05, %v1465_v43  ;;  %v3499_v43 = vpack.c.bf16 %v179_v24, %v178_v40 }
 0x495   :  { %v1480_v47 = vmul.f32 %v3567_v44, %v4174_v54  ;;  %v1458_v48 = vpop.xlane.xlu0 %1457  ;;  %v2998_v54 = vld [vmem:[%s4583_s7 + $0x2] ss:$0 sm:$0xff]  ;;  %v3002_v44 = vld [vmem:[%s4583_s7 + $0xa] ss:$0 sm:$0xff] }
 0x496   :  { %3572 = vrsqrt.f32 %v1471_v46  ;;  %v1466_v50 = vmul.f32 0.03125, %v1458_v48 }
 0x497   :  { %v1522_v52 = vmul.f32 %v2997_v45, %v1480_v47  ;;  %v3008_v47 = vld [vmem:[%s4584_s8 + $0xa] ss:$0 sm:$0xff] }
 0x498   :  { %v3569_v53 = vpop.eup %3568  ;;  %v1472_v55 = vadd.f32 1e-05, %v1466_v50 }
 0x499   :  { %v1481_v59 = vmul.f32 %v3569_v53, %v4178_v58  ;;  %v1461_v32 = vpop.xlane.xlu1 %1460  ;;  %v4252_v60 = vadd.f32 %v3003_v51, %v1522_v52  ;;  %v3004_v58 = vld [vmem:[%s4584_s8 + $0x2] ss:$0 sm:$0xff]  ;;  %v3010_v52 = vld [vmem:[%s4582_s6 + $0x3] ss:$0 sm:$0xff] }
 0x49a   :  { %3574 = vrsqrt.f32 %v1472_v55  ;;  %v1467_v3 = vmul.f32 0.03125, %v1461_v32 }
 0x49b   :  { %3282 = vmatmul.mubr.msk.f32.vlgmr.msra.gmra.mrb[12].mxu0 %vm752_vm5, %v4252_v60  ;;  %v1523_v4 = vmul.f32 %v2998_v54, %v1481_v59  ;;  %v3011_v59 = vld [vmem:[%s4582_s6 + $0x5] ss:$0 sm:$0xff] }
 0x49c   :  { %v3571_v6 = vpop.eup %3570  ;;  %v1473_v7 = vadd.f32 1e-05, %v1467_v3  ;;  %3479 = vmatpush3.bf16.msra.mxu0 %v3478_v56  ;;  %3303 = vmatprep.mubr.msk.f32.mxu0 %vm3765_vm0, %v3766_v1 }
 0x49d   :  { %v1482_v14 = vmul.f32 %v3571_v6, %v4183_v62  ;;  %3480 = vmatprep.subr.bf16.mxu0 %v3764_v0  ;;  %v4278_v17 = vadd.f32 %v3004_v58, %v1523_v4  ;;  %v3005_v62 = vld [vmem:[%s4584_s8 + $0x4] ss:$0 sm:$0xff]  ;;  %v3012_v6 = vld [vmem:[%s4582_s6 + $0x7] ss:$0 sm:$0xff] }
 0x49e   :  { %3576 = vrsqrt.f32 %v1473_v7 }
 0x49f   :  { %3293 = vmatmul.mubr.msk.f32.vlgmr.msra.gmra.mrb[12].mxu1 %vm752_vm5, %v4278_v17  ;;  %v1524_v22 = vmul.f32 %v2999_v12, %v1482_v14 }
 0x4a0   :  { %v3573_v23 = vpop.eup %3572  ;;  %3482 = vmatpush3.bf16.msra.mxu0 %v3481_v8  ;;  %3485 = vmatpush3.bf16.msra.mxu1 %v3484_v10 }
 0x4a1   :  { %v1483_v29 = vmul.f32 %v3573_v23, %v4188_v5  ;;  %v4301_v30 = vadd.f32 %v3005_v62, %v1524_v22  ;;  %3486 = vmatprep.subr.bf16.mxu1 %v3764_v0  ;;  %3489 = vmatprep.subr.bf16.mxu0 %v3764_v0  ;;  %v3006_v5 = vld [vmem:[%s4584_s8 + $0x6] ss:$0 sm:$0xff] }
 0x4a2   :  { %3314 = vmatprep.mubr.msk.f32.mxu1 %vm3765_vm0, %v3766_v1 }
 0x4a3   :  { %3304 = vmatmul.mubr.msk.f32.vlgmr.msra.gmra.mrb[14].mxu0 %vm752_vm5, %v4301_v30  ;;  %v1525_v34 = vmul.f32 %v3000_v28, %v1483_v29 }
 0x4a4   :  { %v3575_v35 = vpop.eup %3574  ;;  %3488 = vmatpush3.bf16.msra.mxu1 %v3487_v26  ;;  %3491 = vmatpush3.bf16.msra.mxu0 %v3490_v27  ;;  %v3014_v27 = vld [vmem:[%s4582_s6 + $0xb] ss:$0 sm:$0xff] }
 0x4a5   :  { %v1484_v39 = vmul.f32 %v3575_v35, %v4193_v11  ;;  %v4325_v16 = vadd.f32 %v3006_v5, %v1525_v34  ;;  %3492 = vmatprep.subr.bf16.mxu0 %v3764_v0  ;;  %3495 = vmatprep.subr.bf16.mxu1 %v3764_v0  ;;  %v3007_v11 = vld [vmem:[%s4584_s8 + $0x8] ss:$0 sm:$0xff] }
 0x4a6   :  { %3325 = vmatprep.mubr.msk.f32.mxu0 %vm3765_vm0, %v3766_v1 }
 0x4a7   :  { %3315 = vmatmul.mubr.msk.f32.vlgmr.msra.gmra.mrb[14].mxu1 %vm752_vm5, %v4325_v16  ;;  %v1526_v41 = vmul.f32 %v3001_v38, %v1484_v39 }
 0x4a8   :  { %v3577_v42 = vpop.eup %3576  ;;  %3494 = vmatpush3.bf16.msra.mxu0 %v3493_v36  ;;  %3497 = vmatpush3.bf16.msra.mxu1 %v3496_v37 }
 0x4a9   :  { %v1485_v46 = vmul.f32 %v3577_v42, %v4198_v18  ;;  %v1568_v45 = vadd.f32 %v3007_v11, %v1526_v41  ;;  %3498 = vmatprep.subr.bf16.mxu1 %v3764_v0  ;;  %3336 = vmatprep.mubr.msk.f32.mxu1 %vm3765_vm0, %v3766_v1 }
 0x4aa   :  { %3501 = vmatprep.subr.bf16.mxu0 %v3764_v0 }
 0x4ab   :  { %3326 = vmatmul.mubr.msk.f32.vlgmr.msra.gmra.mrb[16].mxu0 %vm752_vm5, %v1568_v45  ;;  %v1527_v48 = vmul.f32 %v3002_v44, %v1485_v46 }
 0x4ac   :  { %3500 = vmatpush3.bf16.msra.mxu1 %v3499_v43  ;;  %3347 = vmatprep.mubr.msk.f32.mxu0 %vm3765_vm0, %v3766_v1 }
 0x4ad   :  { %v1569_v18 = vadd.f32 %v3008_v47, %v1527_v48  ;;  %3507 = vmatprep.subr.bf16.mxu1 %v3764_v0 }
 0x4af   :  { %3337 = vmatmul.mubr.msk.f32.vlgmr.msra.gmra.mrb[16].mxu1 %vm752_vm5, %v1569_v18 }
 0x4b0   :  { %3358 = vmatprep.mubr.msk.f32.mxu1 %vm3765_vm0, %v3766_v1 }
 0x56e   :  { %v1675_v25 = vpop.f32.mrb[12].mxu0 }
 0x56f   :  { %v1676_v50 = vadd.f32 %v3009_v49, %v1675_v25  ;;  %v3283_v51 = vpop.f32.mrb[13].mxu0 }
 0x571   :  { %v2044_v53 = vmul.f32 0.01, %v1676_v50 }
 0x572   :  { %v1748_v55 = vpop.f32.mrb[12].mxu1 }
 0x573   :  { %v2050_v56 = vmax.f32 %v1676_v50, %v2044_v53  ;;  %v1749_v54 = vadd.f32 %v3010_v52, %v1748_v55  ;;  %v3294_v57 = vpop.f32.mrb[13].mxu1 }
 0x575   :  { %v2045_v32 = vmul.f32 0.01, %v1749_v54  ;;  %v2056_v61 = vadd.f32 %v2050_v56, %v4252_v60 }
 0x576   :  { %v1821_v63 = vpop.f32.mrb[14].mxu0 }
 0x577   :  { %v2051_v2 = vmax.f32 %v1749_v54, %v2045_v32  ;;  %v1822_v3 = vadd.f32 %v3011_v59, %v1821_v63  ;;  %v3305_v58 = vpop.f32.mrb[15].mxu0  ;;  %v2062_v4 = vsel %vm752_vm5, %v2056_v61, 0.0 }
 0x578   :  { %2063 = vadd.xlane.f32.xlu0 %v2062_v4  ;;  %v2224_v58 = vld [vmem:[%s4585_s9] sm:$0xff]  ;;  %v2225_v4 = vld [vmem:[%s4585_s9 + $0x8] sm:$0xff] }
 0x579   :  { %v2046_v7 = vmul.f32 0.01, %v1822_v3  ;;  %v2057_v8 = vadd.f32 %v2051_v2, %v4278_v17 }
 0x57a   :  { %v1894_v10 = vpop.f32.mrb[14].mxu1 }
 0x57b   :  { %v2052_v12 = vmax.f32 %v1822_v3, %v2046_v7  ;;  %v1895_v13 = vadd.f32 %v3012_v6, %v1894_v10  ;;  %v3316_v14 = vpop.f32.mrb[15].mxu1  ;;  %v2065_v60 = vsel %vm752_vm5, %v2057_v8, 0.0  ;;  %v3502_v6 = vpack.c.bf16 %v2225_v4, %v2224_v58  ;;  %v2226_v7 = vld [vmem:[%s4585_s9 + $0x10] sm:$0xff]  ;;  %v2228_v10 = vld [vmem:[%s4585_s9 + $0x20] sm:$0xff] }
 0x57c   :  { %2066 = vadd.xlane.f32.xlu1 %v2065_v60  ;;  %v2230_v60 = vld [vmem:[%s4585_s9 + $0x30] sm:$0xff] }
 0x57d   :  { %v2047_v9 = vmul.f32 0.01, %v1895_v13  ;;  %v2058_v21 = vadd.f32 %v2052_v12, %v4301_v30  ;;  %3503 = vmatpush3.bf16.msra.mxu0 %v3502_v6 }
 0x57e   :  { %v1967_v62 = vpop.f32.mrb[16].mxu0  ;;  %3504 = vmatprep.subr.bf16.mxu0 %v3764_v0 }
 0x57f   :  { %v2053_v22 = vmax.f32 %v1895_v13, %v2047_v9  ;;  %v1968_v23 = vadd.f32 %v3013_v19, %v1967_v62  ;;  %v3327_v26 = vpop.f32.mrb[17].mxu0  ;;  %v2068_v17 = vsel %vm752_vm5, %v2058_v21, 0.0  ;;  %v2229_v13 = vld [vmem:[%s4585_s9 + $0x28] sm:$0xff]  ;;  %v2231_v19 = vld [vmem:[%s4585_s9 + $0x38] sm:$0xff] }
 0x580   :  { %2069 = vadd.xlane.f32.xlu0 %v2068_v17  ;;  %v3508_v14 = vpack.c.bf16 %v2229_v13, %v2228_v10  ;;  %v3511_v9 = vpack.c.bf16 %v2231_v19, %v2230_v60  ;;  %v2242_v10 = vld [vmem:[%s4585_s9 + $0x90] sm:$0xff]  ;;  %v2244_v60 = vld [vmem:[%s4585_s9 + $0xa0] sm:$0xff]  ;;  %v2245_v19 = vld [vmem:[%s4585_s9 + $0xa8] sm:$0xff] }
 0x581   :  { %v2048_v28 = vmul.f32 0.01, %v1968_v23  ;;  %v2059_v15 = vadd.f32 %v2053_v22, %v4325_v16 }
 0x582   :  { %v2040_v29 = vpop.f32.mrb[16].mxu1  ;;  %3509 = vmatpush3.bf16.msra.mxu1 %v3508_v14  ;;  %v2243_v14 = vld [vmem:[%s4585_s9 + $0x98] sm:$0xff] }
 0x583   :  { %v2054_v31 = vmax.f32 %v1968_v23, %v2048_v28  ;;  %v2041_v20 = vadd.f32 %v3014_v27, %v2040_v29  ;;  %v3338_v33 = vpop.f32.mrb[17].mxu1  ;;  %v2071_v30 = vsel %vm752_vm5, %v2059_v15, 0.0  ;;  %3510 = vmatprep.subr.bf16.mxu1 %v3764_v0 }
 0x584   :  { %2072 = vadd.xlane.f32.xlu1 %v2071_v30  ;;  %v3021_v30 = vld [vmem:[%s4583_s7 + $0x1] ss:$0 sm:$0xff] }
 0x585   :  { %v2049_v5 = vmul.f32 0.01, %v2041_v20  ;;  %v2060_v34 = vadd.f32 %v2054_v31, %v1568_v45 }
 0x586   :  { %3512 = vmatpush3.bf16.msra.mxu1 %v3511_v9 }
 0x587   :  { %v2055_v35 = vmax.f32 %v2041_v20, %v2049_v5  ;;  %v2074_v36 = vsel %vm752_vm5, %v2060_v34, 0.0  ;;  %3519 = vmatprep.subr.bf16.mxu1 %v3764_v0 }
 0x588   :  { %2075 = vadd.xlane.f32.xlu0 %v2074_v36  ;;  %v2233_v36 = vld [vmem:[%s4585_s9 + $0x48] sm:$0xff] }
 0x589   :  { %v2061_v37 = vadd.f32 %v2055_v35, %v1569_v18  ;;  %v2232_v35 = vld [vmem:[%s4585_s9 + $0x40] sm:$0xff] }
 0x58b   :  { %v2077_v38 = vsel %vm752_vm5, %v2061_v37, 0.0 }
 0x58c   :  { %2078 = vadd.xlane.f32.xlu1 %v2077_v38  ;;  %v3027_v38 = vld [vmem:[%s4584_s8 + $0x1] ss:$0 sm:$0xff] }
 0x605   :  { %v2064_v39 = vpop.xlane.xlu0 %2063 }
 0x606   :  { %v2080_v40 = vmul.f32 0.03125, %v2064_v39 }
 0x608   :  { %v4388_v16 = vsub.f32 %v2056_v61, %v2080_v40 }
 0x609   :  { %v2067_v24 = vpop.xlane.xlu1 %2066 }
 0x60a   :  { %v2081_v11 = vmul.f32 0.03125, %v2067_v24  ;;  %v2092_v41 = vmul.f32 %v4388_v16, %v4388_v16 }
 0x60c   :  { %v4392_v42 = vsub.f32 %v2057_v8, %v2081_v11  ;;  %v2098_v43 = vsel %vm752_vm5, %v2092_v41, 0.0  ;;  %v2227_v8 = vld [vmem:[%s4585_s9 + $0x18] sm:$0xff]  ;;  %v3514_v11 = vpack.c.bf16 %v2233_v36, %v2232_v35  ;;  %v2234_v41 = vld [vmem:[%s4585_s9 + $0x50] sm:$0xff]  ;;  %v3768_v36 = vmov 0  }
 0x60d   :  { %v2070_v44 = vpop.xlane.xlu0 %2069  ;;  %2099 = vadd.xlane.f32.xlu0 %v2098_v43  ;;  %v3505_v12 = vpack.c.bf16 %v2227_v8, %v2226_v7  ;;  %v3024_v8 = vld [vmem:[%s4583_s7 + $0x7] ss:$0 sm:$0xff]  ;;  %3553 = vset.pattern.permute.xlu1 %v3768_v36 }
 0x60e   :  { %v2082_v46 = vmul.f32 0.03125, %v2070_v44  ;;  %v2093_v45 = vmul.f32 %v4392_v42, %v4392_v42  ;;  %3552 = vset.pattern.permute.xlu0 %v3768_v36 }
 0x60f   :  { %3506 = vmatpush3.bf16.msra.mxu0 %v3505_v12 }
 0x610   :  { %v4397_v47 = vsub.f32 %v2058_v21, %v2082_v46  ;;  %v2101_v48 = vsel %vm752_vm5, %v2093_v45, 0.0  ;;  %3513 = vmatprep.subr.bf16.mxu0 %v3764_v0  ;;  %v2235_v45 = vld [vmem:[%s4585_s9 + $0x58] sm:$0xff] }
 0x611   :  { %v2073_v18 = vpop.xlane.xlu1 %2072  ;;  %2102 = vadd.xlane.f32.xlu1 %v2101_v48  ;;  %v2236_v48 = vld [vmem:[%s4585_s9 + $0x60] sm:$0xff] }
 0x612   :  { %v2083_v49 = vmul.f32 0.03125, %v2073_v18  ;;  %v2094_v25 = vmul.f32 %v4397_v47, %v4397_v47  ;;  %v2237_v18 = vld [vmem:[%s4585_s9 + $0x68] sm:$0xff] }
 0x614   :  { %v4402_v50 = vsub.f32 %v2059_v15, %v2083_v49  ;;  %v2104_v51 = vsel %vm752_vm5, %v2094_v25, 0.0 }
 0x615   :  { %2105 = vadd.xlane.f32.xlu0 %v2104_v51  ;;  %v2076_v52 = vpop.xlane.xlu0 %2075 }
 0x616   :  { %v2084_v53 = vmul.f32 0.03125, %v2076_v52  ;;  %v2095_v55 = vmul.f32 %v4402_v50, %v4402_v50 }
 0x618   :  { %v4407_v56 = vsub.f32 %v2060_v34, %v2084_v53  ;;  %v2107_v54 = vsel %vm752_vm5, %v2095_v55, 0.0  ;;  %v3517_v53 = vpack.c.bf16 %v2235_v45, %v2234_v41  ;;  %v3520_v55 = vpack.c.bf16 %v2237_v18, %v2236_v48  ;;  %v3046_v48 = vld [vmem:[#allocation10 + $0x1] ss:$0 sm:$0xff] }
 0x619   :  { %2108 = vadd.xlane.f32.xlu1 %v2107_v54  ;;  %v2079_v57 = vpop.xlane.xlu1 %2078  ;;  %v3023_v54 = vld [vmem:[%s4583_s7 + $0x5] ss:$0 sm:$0xff] }
 0x61a   :  { %v2085_v59 = vmul.f32 0.03125, %v2079_v57  ;;  %v2096_v32 = vmul.f32 %v4407_v56, %v4407_v56  ;;  %v2238_v57 = vld [vmem:[%s4585_s9 + $0x70] sm:$0xff] }
 0x61c   :  { %v4412_v61 = vsub.f32 %v2061_v37, %v2085_v59  ;;  %v2110_v63 = vsel %vm752_vm5, %v2096_v32, 0.0 }
 0x61d   :  { %2111 = vadd.xlane.f32.xlu0 %v2110_v63  ;;  %v2239_v63 = vld [vmem:[%s4585_s9 + $0x78] sm:$0xff] }
 0x61e   :  { %v2097_v2 = vmul.f32 %v4412_v61, %v4412_v61  ;;  %v3523_v6 = vpack.c.bf16 %v2239_v63, %v2238_v57 }
 0x620   :  { %v2113_v3 = vsel %vm752_vm5, %v2097_v2, 0.0  ;;  %v2240_v2 = vld [vmem:[%s4585_s9 + $0x80] sm:$0xff] }
 0x621   :  { %2114 = vadd.xlane.f32.xlu1 %v2113_v3  ;;  %v2241_v3 = vld [vmem:[%s4585_s9 + $0x88] sm:$0xff] }
 0x622   :  { %v3526_v7 = vpack.c.bf16 %v2241_v3, %v2240_v2  ;;  %v3037_v2 = vld [vmem:[#allocation9 + $0x4] ss:$0 sm:$0xff] }
 0x69a   :  { %v2100_v21 = vpop.xlane.xlu0 %2099 }
 0x69b   :  { %v2116_v62 = vmul.f32 0.03125, %v2100_v21 }
 0x69d   :  { %v2122_v22 = vadd.f32 1e-05, %v2116_v62  ;;  %v3529_v62 = vpack.c.bf16 %v2243_v14, %v2242_v10 }
 0x69e   :  { %v2103_v23 = vpop.xlane.xlu1 %2102 }
 0x69f   :  { %3578 = vrsqrt.f32 %v2122_v22  ;;  %v2117_v26 = vmul.f32 0.03125, %v2103_v23  ;;  %v3532_v22 = vpack.c.bf16 %v2245_v19, %v2244_v60  ;;  %v3025_v23 = vld [vmem:[%s4583_s7 + $0x9] ss:$0 sm:$0xff]  ;;  %v3049_v19 = vld [vmem:[#allocation10 + $0x4] ss:$0 sm:$0xff] }
 0x6a1   :  { %v2123_v17 = vadd.f32 1e-05, %v2117_v26 }
 0x6a2   :  { %v2106_v27 = vpop.xlane.xlu0 %2105 }
 0x6a3   :  { %3580 = vrsqrt.f32 %v2123_v17  ;;  %v2118_v28 = vmul.f32 0.03125, %v2106_v27  ;;  %v2246_v27 = vld [vmem:[%s4585_s9 + $0xb0] sm:$0xff] }
 0x6a5   :  { %v2124_v15 = vadd.f32 1e-05, %v2118_v28  ;;  %v2247_v28 = vld [vmem:[%s4585_s9 + $0xb8] sm:$0xff] }
 0x6a6   :  { %v2109_v29 = vpop.xlane.xlu1 %2108 }
 0x6a7   :  { %3582 = vrsqrt.f32 %v2124_v15  ;;  %v2119_v31 = vmul.f32 0.03125, %v2109_v29 }
 0x6a9   :  { %v3579_v20 = vpop.eup %3578  ;;  %v2125_v33 = vadd.f32 1e-05, %v2119_v31  ;;  %v3535_v31 = vpack.c.bf16 %v2247_v28, %v2246_v27 }
 0x6aa   :  { %v2134_v5 = vmul.f32 %v3579_v20, %v4388_v16  ;;  %v2112_v34 = vpop.xlane.xlu0 %2111  ;;  %v3022_v16 = vld [vmem:[%s4583_s7 + $0x3] ss:$0 sm:$0xff]  ;;  %v3026_v20 = vld [vmem:[%s4583_s7 + $0xb] ss:$0 sm:$0xff] }
 0x6ab   :  { %3584 = vrsqrt.f32 %v2125_v33  ;;  %v2120_v37 = vmul.f32 0.03125, %v2112_v34 }
 0x6ac   :  { %v2176_v39 = vmul.f32 %v3021_v30, %v2134_v5  ;;  %v3032_v5 = vld [vmem:[%s4584_s8 + $0xb] ss:$0 sm:$0xff] }
 0x6ad   :  { %v3581_v40 = vpop.eup %3580  ;;  %v2126_v24 = vadd.f32 1e-05, %v2120_v37 }
 0x6ae   :  { %v2135_v43 = vmul.f32 %v3581_v40, %v4392_v42  ;;  %v2115_v44 = vpop.xlane.xlu1 %2114  ;;  %v2218_v46 = vadd.f32 %v3027_v38, %v2176_v39  ;;  %v3028_v42 = vld [vmem:[%s4584_s8 + $0x3] ss:$0 sm:$0xff]  ;;  %v3034_v39 = vld [vmem:[#allocation9 + $0x1] ss:$0 sm:$0xff] }
 0x6af   :  { %3586 = vrsqrt.f32 %v2126_v24  ;;  %v2121_v49 = vmul.f32 0.03125, %v2115_v44  ;;  %v3045_v24 = vld [vmem:[#allocation10] ss:$0 sm:$0xff] }
 0x6b0   :  { %3348 = vmatmul.mubr.msk.f32.vlgmr.msra.gmra.mrb[18].mxu0 %vm752_vm5, %v2218_v46  ;;  %v2177_v25 = vmul.f32 %v3022_v16, %v2135_v43  ;;  %v3035_v43 = vld [vmem:[#allocation9 + $0x2] ss:$0 sm:$0xff] }
 0x6b1   :  { %v3583_v51 = vpop.eup %3582  ;;  %v2127_v52 = vadd.f32 1e-05, %v2121_v49  ;;  %3515 = vmatpush3.bf16.msra.mxu0 %v3514_v11  ;;  %3369 = vmatprep.mubr.msk.f32.mxu0 %vm3765_vm0, %v3766_v1 }
 0x6b2   :  { %v2136_v59 = vmul.f32 %v3583_v51, %v4397_v47  ;;  %3516 = vmatprep.subr.bf16.mxu0 %v3764_v0  ;;  %v2219_v32 = vadd.f32 %v3028_v42, %v2177_v25  ;;  %v3029_v47 = vld [vmem:[%s4584_s8 + $0x5] ss:$0 sm:$0xff]  ;;  %v3036_v51 = vld [vmem:[#allocation9 + $0x3] ss:$0 sm:$0xff] }
 0x6b3   :  { %3588 = vrsqrt.f32 %v2127_v52 }
 0x6b4   :  { %3359 = vmatmul.mubr.msk.f32.vlgmr.msra.gmra.mrb[18].mxu1 %vm752_vm5, %v2219_v32  ;;  %v2178_v58 = vmul.f32 %v3023_v54, %v2136_v59  ;;  %v3047_v54 = vld [vmem:[#allocation10 + $0x2] ss:$0 sm:$0xff] }
 0x6b5   :  { %v3585_v4 = vpop.eup %3584  ;;  %3518 = vmatpush3.bf16.msra.mxu0 %v3517_v53  ;;  %3521 = vmatpush3.bf16.msra.mxu1 %v3520_v55 }
 0x6b6   :  { %v2137_v12 = vmul.f32 %v3585_v4, %v4402_v50  ;;  %v2220_v13 = vadd.f32 %v3029_v47, %v2178_v58  ;;  %3522 = vmatprep.subr.bf16.mxu1 %v3764_v0  ;;  %3525 = vmatprep.subr.bf16.mxu0 %v3764_v0  ;;  %v3030_v50 = vld [vmem:[%s4584_s8 + $0x7] ss:$0 sm:$0xff]  ;;  %v3048_v4 = vld [vmem:[#allocation10 + $0x3] ss:$0 sm:$0xff] }
 0x6b7   :  { %3380 = vmatprep.mubr.msk.f32.mxu1 %vm3765_vm0, %v3766_v1 }
 0x6b8   :  { %3370 = vmatmul.mubr.msk.f32.vlgmr.msra.gmra.mrb[20].mxu0 %vm752_vm5, %v2220_v13  ;;  %v2179_v9 = vmul.f32 %v3024_v8, %v2137_v12  ;;  %v3038_v12 = vld [vmem:[#allocation9 + $0x5] ss:$0 sm:$0xff] }
 0x6b9   :  { %v3587_v21 = vpop.eup %3586  ;;  %3524 = vmatpush3.bf16.msra.mxu1 %v3523_v6  ;;  %3527 = vmatpush3.bf16.msra.mxu0 %v3526_v7 }
 0x6ba   :  { %v2138_v26 = vmul.f32 %v3587_v21, %v4407_v56  ;;  %v2221_v17 = vadd.f32 %v3030_v50, %v2179_v9  ;;  %3528 = vmatprep.subr.bf16.mxu0 %v3764_v0  ;;  %3531 = vmatprep.subr.bf16.mxu1 %v3764_v0  ;;  %v3031_v56 = vld [vmem:[%s4584_s8 + $0x9] ss:$0 sm:$0xff] }
 0x6bb   :  { %3391 = vmatprep.mubr.msk.f32.mxu0 %vm3765_vm0, %v3766_v1 }
 0x6bc   :  { %3381 = vmatmul.mubr.msk.f32.vlgmr.msra.gmra.mrb[20].mxu1 %vm752_vm5, %v2221_v17  ;;  %v2180_v15 = vmul.f32 %v3025_v23, %v2138_v26  ;;  %v3050_v26 = vld [vmem:[#allocation10 + $0x5] ss:$0 sm:$0xff] }
 0x6bd   :  { %v3589_v29 = vpop.eup %3588  ;;  %3530 = vmatpush3.bf16.msra.mxu0 %v3529_v62  ;;  %3533 = vmatpush3.bf16.msra.mxu1 %v3532_v22 }
 0x6be   :  { %v2139_v33 = vmul.f32 %v3589_v29, %v4412_v61  ;;  %v2222_v30 = vadd.f32 %v3031_v56, %v2180_v15  ;;  %3534 = vmatprep.subr.bf16.mxu1 %v3764_v0  ;;  %3402 = vmatprep.mubr.msk.f32.mxu1 %vm3765_vm0, %v3766_v1  ;;  %v3033_v61 = vld [vmem:[#allocation9] ss:$0 sm:$0xff]  ;;  %v2807_v15 = vld [vmem:[%s4588_s12] sm:$0x3f]  ;;  %v2812_v29 = vlaneseq }
 0x6c0   :  { %3392 = vmatmul.mubr.msk.f32.vlgmr.msra.gmra.mrb[22].mxu0 %vm752_vm5, %v2222_v30  ;;  %v2181_v34 = vmul.f32 %v3026_v20, %v2139_v33  ;;  %v2909_v20 = vand.u32 127, %v2812_v29 }
 0x6c1   :  { %3536 = vmatpush3.bf16.msra.mxu1 %v3535_v31  ;;  %v2813_v31 = vshrl.u32 %v2812_v29, 7 }
 0x6c2   :  { %v2223_v35 = vadd.f32 %v3032_v5, %v2181_v34 }
 0x6c3   :  { %v4565_v33 = vsub.s32 %v2909_v20, %v2813_v31  ;;  %v2818_v36 = vsub.s32 1, %v2813_v31 }
 0x6c4   :  { %3403 = vmatmul.mubr.msk.f32.vlgmr.msra.gmra.mrb[22].mxu1 %vm752_vm5, %v2223_v35  ;;  %v2814_v35 = vsub.s32 0, %v2813_v31 }
 0x783   :  { %v2359_v37 = vpop.f32.mrb[18].mxu0 }
 0x784   :  { %v2360_v0 = vadd.f32 %v3033_v61, %v2359_v37  ;;  %v3349_v38 = vpop.f32.mrb[19].mxu0  ;;  %v2822_v61 = vsub.s32 2, %v2813_v31  ;;  %v2826_v37 = vsub.s32 3, %v2813_v31 }
 0x786   :  { %v2728_v1 = vmul.f32 0.01, %v2360_v0 }
 0x787   :  { %v2432_v40 = vpop.f32.mrb[18].mxu1 }
 0x788   :  { %v2734_v11 = vmax.f32 %v2360_v0, %v2728_v1  ;;  %v2433_v16 = vadd.f32 %v3034_v39, %v2432_v40  ;;  %v3360_v41 = vpop.f32.mrb[19].mxu1 }
 0x78a   :  { %v2729_v44 = vmul.f32 0.01, %v2433_v16  ;;  %v2782_v46 = vmul.f32 %v3045_v24, %v2734_v11  ;;  %v2830_v24 = vsub.s32 4, %v2813_v31 }
 0x78b   :  { %v2505_v45 = vpop.f32.mrb[20].mxu0 }
 0x78c   :  { %v2735_v18 = vmax.f32 %v2433_v16, %v2729_v44  ;;  %v2506_v49 = vadd.f32 %v3035_v43, %v2505_v45  ;;  %v3371_v42 = vpop.f32.mrb[21].mxu0  ;;  %v2789_v25 = vsel %vm2788_vm6, %v2782_v46, 0.0 }
 0x78d   :  { %2790 = vadd.xlane.f32.xlu0 %v2789_v25 }
 0x78e   :  { %v2730_v52 = vmul.f32 0.01, %v2506_v49  ;;  %v2783_v53 = vmul.f32 %v3046_v48, %v2735_v18  ;;  %v2834_v48 = vsub.s32 5, %v2813_v31 }
 0x78f   :  { %v2578_v55 = vpop.f32.mrb[20].mxu1 }
 0x790   :  { %v2736_v57 = vmax.f32 %v2506_v49, %v2730_v52  ;;  %v2579_v59 = vadd.f32 %v3036_v51, %v2578_v55  ;;  %v3382_v32 = vpop.f32.mrb[21].mxu1  ;;  %v2792_v63 = vsel %vm2788_vm6, %v2783_v53, 0.0 }
 0x791   :  { %2793 = vadd.xlane.f32.xlu1 %v2792_v63 }
 0x792   :  { %v2731_v3 = vmul.f32 0.01, %v2579_v59  ;;  %v2784_v47 = vmul.f32 %v3047_v54, %v2736_v57 }
 0x793   :  { %v2651_v58 = vpop.f32.mrb[22].mxu0 }
 0x794   :  { %v2737_v6 = vmax.f32 %v2579_v59, %v2731_v3  ;;  %v2652_v7 = vadd.f32 %v3037_v2, %v2651_v58  ;;  %v3393_v8 = vpop.f32.mrb[23].mxu0  ;;  %v2795_v10 = vsel %vm2788_vm6, %v2784_v47, 0.0 }
 0x795   :  { %2796 = vadd.xlane.f32.xlu0 %v2795_v10 }
 0x796   :  { %v2732_v13 = vmul.f32 0.01, %v2652_v7  ;;  %v2785_v14 = vmul.f32 %v3048_v4, %v2737_v6 }
 0x797   :  { %v2724_v60 = vpop.f32.mrb[22].mxu1 }
 0x798   :  { %v2738_v50 = vmax.f32 %v2652_v7, %v2732_v13  ;;  %v2725_v9 = vadd.f32 %v3038_v12, %v2724_v60  ;;  %v3404_v21 = vpop.f32.mrb[23].mxu1  ;;  %v2798_v62 = vsel %vm2788_vm6, %v2785_v14, 0.0 }
 0x799   :  { %2799 = vadd.xlane.f32.xlu1 %v2798_v62 }
 0x79a   :  { %v2733_v22 = vmul.f32 0.01, %v2725_v9  ;;  %v2786_v23 = vmul.f32 %v3049_v19, %v2738_v50 }
 0x79c   :  { %v2739_v17 = vmax.f32 %v2725_v9, %v2733_v22  ;;  %v2801_v27 = vsel %vm2788_vm6, %v2786_v23, 0.0 }
 0x79d   :  { %2802 = vadd.xlane.f32.xlu0 %v2801_v27 }
 0x79e   :  { %v2787_v28 = vmul.f32 %v3050_v26, %v2739_v17 }
 0x7a0   :  { %v2804_v56 = vsel %vm2788_vm6, %v2787_v28, 0.0 }
 0x7a1   :  { %2805 = vadd.xlane.f32.xlu1 %v2804_v56 }
 0x7b3   :  { %2810 = vperm.xlu0 %3552, %v2807_v15  }
 0x81a   :  { %v2791_v30 = vpop.xlane.xlu0 %2790 }
 0x81e   :  { %v2794_v40 = vpop.xlane.xlu1 %2793 }
 0x822   :  { %v2797_v5 = vpop.xlane.xlu0 %2796 }
 0x826   :  { %v2800_v45 = vpop.xlane.xlu1 %2799 }
 0x82a   :  { %v2803_v34 = vpop.xlane.xlu0 %2802 }
 0x82e   :  { %v2806_v53 = vpop.xlane.xlu1 %2805 }
 0x832   :  { %v2811_v0 = vpop.permute.xlu0 %2810 }
 0x833   :  { %v2815_v38 = vrot.slane %v2811_v0, %v2814_v35  ;;  %v2819_v39 = vrot.slane %v2811_v0, %v2818_v36  ;;  %v2823_v1 = vrot.slane %v2811_v0, %v2822_v61  ;;  %v2827_v11 = vrot.slane %v2811_v0, %v2826_v37 }
 0x834   :  { %v2831_v18 = vrot.slane %v2811_v0, %v2830_v24  ;;  %v2835_v25 = vrot.slane %v2811_v0, %v2834_v48 }
 0x835   :  { %v2842_v16 = vadd.f32 %v2815_v38, %v2791_v30  ;;  %v2843_v41 = vadd.f32 %v2819_v39, %v2794_v40  ;;  %v2844_v43 = vadd.f32 %v2823_v1, %v2797_v5  ;;  %v2845_v49 = vadd.f32 %v2827_v11, %v2800_v45 }
 0x836   :  { %v2846_v51 = vadd.f32 %v2831_v18, %v2803_v34  ;;  %v2847_v55 = vadd.f32 %v2835_v25, %v2806_v53 }
 0x837   :  { %v3051_v44 = vmul.f32 -1.442695, %v2842_v16  ;;  %v3052_v46 = vmul.f32 -1.442695, %v2843_v41  ;;  %v3053_v42 = vmul.f32 -1.442695, %v2844_v43 }
 0x838   :  { %v3054_v52 = vmul.f32 -1.442695, %v2845_v49  ;;  %v3055_v54 = vmul.f32 -1.442695, %v2846_v51  ;;  %v3056_v63 = vmul.f32 -1.442695, %v2847_v55 }
 0x839   :  { %3590 = vpow2.f32 %v3051_v44 }
 0x83a   :  { %3592 = vpow2.f32 %v3052_v46 }
 0x83b   :  { %3594 = vpow2.f32 %v3053_v42 }
 0x83c   :  { %3596 = vpow2.f32 %v3054_v52 }
 0x83d   :  { %3598 = vpow2.f32 %v3055_v54 }
 0x843   :  { %v3591_v57 = vpop.eup %3590 }
 0x844   :  { %v3593_v59 = vpop.eup %3592  ;;  %v2866_v32 = vadd.f32 1.0, %v3591_v57 }
 0x845   :  { %v2867_v2 = vadd.f32 1.0, %v3593_v59  ;;  %v3595_v3 = vpop.eup %3594 }
 0x846   :  { %3600 = vrcp.f32 %v2866_v32  ;;  %v2868_v47 = vadd.f32 1.0, %v3595_v3  ;;  %v3597_v58 = vpop.eup %3596 }
 0x847   :  { %3602 = vpow2.f32 %v3056_v63  ;;  %v2869_v4 = vadd.f32 1.0, %v3597_v58  ;;  %v3599_v6 = vpop.eup %3598 }
 0x848   :  { %3604 = vrcp.f32 %v2867_v2  ;;  %v2870_v8 = vadd.f32 1.0, %v3599_v6 }
 0x849   :  { %3606 = vrcp.f32 %v2868_v47 }
 0x84a   :  { %3608 = vrcp.f32 %v2869_v4 }
 0x84b   :  { %3610 = vrcp.f32 %v2870_v8 }
 0x850   :  { %v3601_v7 = vpop.eup %3600 }
 0x851   :  { %2891 = vperm.xlu1 %3553, %v3601_v7   ;;  %v3603_v10 = vpop.eup %3602 }
 0x852   :  { %v3605_v12 = vpop.eup %3604  ;;  %v2871_v13 = vadd.f32 1.0, %v3603_v10 }
 0x853   :  { %v3607_v14 = vpop.eup %3606 }
 0x854   :  { %3612 = vrcp.f32 %v2871_v13  ;;  %v3609_v60 = vpop.eup %3608 }
 0x855   :  { %2894 = vperm.xlu1 %3553, %v3605_v12   ;;  %v3611_v19 = vpop.eup %3610 }
 0x859   :  { %2897 = vperm.xlu1 %3553, %v3607_v14  }
 0x85d   :  { %2900 = vperm.xlu1 %3553, %v3609_v60  }
 0x85e   :  { %v3613_v50 = vpop.eup %3612 }
 0x861   :  { %2903 = vperm.xlu1 %3553, %v3611_v19  }
 0x865   :  { %2906 = vperm.xlu1 %3553, %v3613_v50  }
 0x8d0   :  { %v2892_v9 = vpop.permute.xlu1 %2891 }
 0x8d1   :  { %v2913_v27 = vrot.slane %v2892_v9, %v4565_v33 }
 0x8d4   :  { %v2895_v21 = vpop.permute.xlu1 %2894 }
 0x8d5   :  { %v2917_v23 = vrot.slane %v2895_v21, %v4565_v33 }
 0x8d7   :  { %v2935_v15 = vsel %vm2934_vm7, %v2917_v23, %v2913_v27 }
 0x8d8   :  { %v2898_v62 = vpop.permute.xlu1 %2897 }
 0x8d9   :  { %v2921_v26 = vrot.slane %v2898_v62, %v4565_v33 }
 0x8db   :  { %v2937_v29 = vsel %vm2936_vm8, %v2921_v26, %v2935_v15 }
 0x8dc   :  { %v2901_v22 = vpop.permute.xlu1 %2900 }
 0x8dd   :  { %v2925_v28 = vrot.slane %v2901_v22, %v4565_v33 }
 0x8df   :  { %v2939_v20 = vsel %vm2938_vm9, %v2925_v28, %v2937_v29 }
 0x8e0   :  { %v2904_v17 = vpop.permute.xlu1 %2903 }
 0x8e1   :  { %v2929_v56 = vrot.slane %v2904_v17, %v4565_v33 }
 0x8e3   :  { %v2941_v5 = vsel %vm2940_vm10, %v2929_v56, %v2939_v20 }
 0x8e4   :  { %v2907_v31 = vpop.permute.xlu1 %2906 }
 0x8e5   :  { %v2933_v30 = vrot.slane %v2907_v31, %v4565_v33 }
 0x8e7   :  { %v2943_v34 = vsel %vm2942_vm11, %v2933_v30, %v2941_v5 }
 0x8e8   :  { %2946 = vst.msk [vmem:[%s4589_s13] sm:$0x3f] %vm2945_vm12, %v2943_v34 }
 0x8e9   :  { %2951 = vsyncpa [#allocation3], 1 }
 0x8ea   :  { %2952 = vsyncpa [#allocation5], 1 }
 0x8eb   :  { %2953 = vsyncpa [#allocation8], 1 }
 0x8ec   :  { %2954 = vsyncpa [#allocation11], 1 }

</bundles_post_ra>
